<compile_context>
chip_gen: v5e
topology: v5e:2x2
jax: 0.10.0
libtpu: 0.0.40
codegen_flags: <defaults>
</compile_context>

<pallas_src>
import functools

import jax
import jax.numpy as jnp
import numpy as np
from jax import lax
from jax.experimental import pallas as pl
from jax.experimental.pallas import tpu as pltpu


def lstm_fc_kernel(x_ref, wih0_ref, whh0_ref, b0_ref,
                   wih1_ref, whh1_ref, b1_ref,
                   wfc_ref, bfc_ref,
                   out_ref,
                   gx_ref,
                   *, B, T, H):
    """Single-invocation 2-layer LSTM (wavefront over layers) + FC head.

    x_ref: time-major flattened input (T*B, I); row block [t*B:(t+1)*B] is
    time step t.  Gate columns of w_ih / w_hh / bias are pre-permuted to
    [i, f, o, g] so the three sigmoids collapse into one contiguous op.
    """

    def gate_update(gates, c):
        # gates: (B, 4H), column order [i, f, o, g]
        sig = jax.nn.sigmoid(gates[:, :3 * H])     # one contiguous (B, 3H) op
        g_g = jnp.tanh(gates[:, 3 * H:])
        i_g = sig[:, :H]
        f_g = sig[:, H:2 * H]
        o_g = sig[:, 2 * H:]
        c_new = f_g * c + i_g * g_g
        h_new = o_g * jnp.tanh(c_new)
        return h_new, c_new

    zero = jnp.zeros((B, H), jnp.float32)

    # Hoisted, batched layer-0 input projection: one (T*B, I) x (I, 4H) matmul.
    gx_ref[...] = (jnp.dot(x_ref[...], wih0_ref[...],
                           preferred_element_type=jnp.float32)
                   + b0_ref[...])

    # Weights / biases loaded (and broadcast) once, outside the loop.
    whh0 = whh0_ref[...]
    wih1 = wih1_ref[...]
    whh1 = whh1_ref[...]
    b1v = jnp.broadcast_to(b1_ref[...], (B, 4 * H))

    # Wavefront prologue: layer-0 step 0 (h0_{-1} = c0_{-1} = 0, so no matmul).
    h0, c0 = gate_update(gx_ref[pl.ds(0, B), :], zero)
    h1, c1 = zero, zero

    # Super-step s computes layer-0 step s and layer-1 step s-1.  Every matmul
    # below depends only on the loop carry, so the three MXU pushes per
    # super-step are mutually independent and pipeline.
    def superstep(s, carry):
        h0, c0, h1, c1 = carry
        r = pl.multiple_of(s * B, B)
        # layer-1 step s-1: gates = b1 + h0_{s-1} @ W_ih1 + h1_{s-2} @ W_hh1
        g1 = (b1v
              + jnp.dot(h0, wih1, preferred_element_type=jnp.float32)
              + jnp.dot(h1, whh1, preferred_element_type=jnp.float32))
        # layer-0 step s: gates = gx[s] + h0_{s-1} @ W_hh0
        g0 = gx_ref[pl.ds(r, B), :] + jnp.dot(
            h0, whh0, preferred_element_type=jnp.float32)
        h1n, c1n = gate_update(g1, c1)
        h0n, c0n = gate_update(g0, c0)
        return (h0n, c0n, h1n, c1n)

    h0, c0, h1, c1 = lax.fori_loop(1, T, superstep, (h0, c0, h1, c1),
                                   unroll=True)

    # Wavefront epilogue: layer-1 step T-1 (uses h0_{T-1}, h1_{T-2}).
    g1 = (b1v
          + jnp.dot(h0, wih1, preferred_element_type=jnp.float32)
          + jnp.dot(h1, whh1, preferred_element_type=jnp.float32))
    h1, _ = gate_update(g1, c1)

    # FC head on the last hidden state of the top layer.
    out_ref[...] = (jnp.dot(h1, wfc_ref[...],
                            preferred_element_type=jnp.float32)
                    + bfc_ref[...])


def _permute_gate_cols(w):
    """Reorder gate columns [i, f, g, o] -> [i, f, o, g] along the last axis."""
    H = w.shape[-1] // 4
    return jnp.concatenate(
        [w[..., :2 * H], w[..., 3 * H:], w[..., 2 * H:3 * H]], axis=-1)


def rnn_forward(x_btI, params):
    """x_btI: (B, T, I) batch-first, like the PyTorch module."""
    (wih0, whh0, b0, wih1, whh1, b1, wfc, bfc) = params
    B, T, I = x_btI.shape
    H = whh0.shape[0]
    C = wfc.shape[1]

    # Time-major, flattened so each time step is a contiguous (B, I) row block.
    x_flat = jnp.transpose(x_btI, (1, 0, 2)).reshape(T * B, I)

    # Permute gate columns so sigmoid runs on one contiguous (B, 3H) slice.
    wih0p, whh0p, b0p = (_permute_gate_cols(w) for w in (wih0, whh0, b0))
    wih1p, whh1p, b1p = (_permute_gate_cols(w) for w in (wih1, whh1, b1))

    vmem = pl.BlockSpec(memory_space=pltpu.MemorySpace.VMEM)
    kernel = functools.partial(lstm_fc_kernel, B=B, T=T, H=H)

    return pl.pallas_call(
        kernel,
        out_shape=jax.ShapeDtypeStruct((B, C), jnp.float32),
        in_specs=[vmem] * 9,
        out_specs=vmem,
        scratch_shapes=[
            pltpu.VMEM((T * B, 4 * H), jnp.float32),   # batched layer-0 gate inputs
        ],
    )(x_flat, wih0p, whh0p, b0p, wih1p, whh1p, b1p, wfc, bfc)


def rnn_reference(x_btI, params):
    """Pure-JAX reference of the PyTorch module's forward (PyTorch gate order)."""
    (wih0, whh0, b0, wih1, whh1, b1, wfc, bfc) = params
    B = x_btI.shape[0]
    H = whh0.shape[0]

    def cell(x_t, h, c, wih, whh, b):
        gates = x_t @ wih + h @ whh + b
        i_g = jax.nn.sigmoid(gates[:, 0 * H:1 * H])
        f_g = jax.nn.sigmoid(gates[:, 1 * H:2 * H])
        g_g = jnp.tanh(gates[:, 2 * H:3 * H])
        o_g = jax.nn.sigmoid(gates[:, 3 * H:4 * H])
        c_new = f_g * c + i_g * g_g
        h_new = o_g * jnp.tanh(c_new)
        return h_new, c_new

    def step(carry, x_t):
        h0, c0, h1, c1 = carry
        h0, c0 = cell(x_t, h0, c0, wih0, whh0, b0)
        h1, c1 = cell(h0, h1, c1, wih1, whh1, b1)
        return (h0, c0, h1, c1), None

    z = jnp.zeros((B, H), jnp.float32)
    (h0, c0, h1, c1), _ = jax.lax.scan(
        step, (z, z, z, z), jnp.transpose(x_btI, (1, 0, 2)))
    return h1 @ wfc + bfc


def init_params(key, input_size, hidden_size, num_classes):
    """Deterministic init (uniform +/- 1/sqrt(H), mimicking PyTorch defaults)."""
    H = hidden_size
    k = 1.0 / np.sqrt(H)
    ks = jax.random.split(key, 10)
    u = lambda kk, shape: jax.random.uniform(kk, shape, jnp.float32, -k, k)
    wih0 = u(ks[0], (input_size, 4 * H))
    whh0 = u(ks[1], (H, 4 * H))
    b0 = u(ks[2], (1, 4 * H)) + u(ks[3], (1, 4 * H))   # b_ih + b_hh combined
    wih1 = u(ks[4], (H, 4 * H))
    whh1 = u(ks[5], (H, 4 * H))
    b1 = u(ks[6], (1, 4 * H)) + u(ks[7], (1, 4 * H))
    wfc = u(ks[8], (H, num_classes))                   # Linear weight, transposed
    bfc = u(ks[9], (1, num_classes))
    return (wih0, whh0, b0, wih1, whh1, b1, wfc, bfc)


if __name__ == "__main__":
    # Small shapes consistent with the module: num_layers = 2 (fixed in kernel).
    B, T, I, H, C = 8, 8, 32, 32, 10

    key = jax.random.PRNGKey(0)
    kx, kp = jax.random.split(key)
    x = jax.random.normal(kx, (B, T, I), jnp.float32)
    params = init_params(kp, I, H, C)

    out = jax.block_until_ready(rnn_forward(x, params))
    ref = jax.block_until_ready(rnn_reference(x, params))

    assert out.shape == (B, C)
    np.testing.assert_allclose(np.asarray(out), np.asarray(ref),
                               rtol=1e-5, atol=3e-5)
    print("KERNEL_OK")
</pallas_src>

<mosaic_0001>
module attributes {stable_mosaic.version = 11 : i64} {
  func.func @lstm_fc_kernel(%arg0: memref<64x32xf32, #tpu.memory_space<vmem>>, %arg1: memref<32x128xf32, #tpu.memory_space<vmem>>, %arg2: memref<32x128xf32, #tpu.memory_space<vmem>>, %arg3: memref<1x128xf32, #tpu.memory_space<vmem>>, %arg4: memref<32x128xf32, #tpu.memory_space<vmem>>, %arg5: memref<32x128xf32, #tpu.memory_space<vmem>>, %arg6: memref<1x128xf32, #tpu.memory_space<vmem>>, %arg7: memref<32x10xf32, #tpu.memory_space<vmem>>, %arg8: memref<1x10xf32, #tpu.memory_space<vmem>>, %arg9: memref<8x10xf32, #tpu.memory_space<vmem>>, %arg10: memref<64x128xf32, #tpu.memory_space<vmem>>) attributes {dimension_semantics = [], scalar_prefetch = 0 : i64, scratch_operands = 1 : i64, tpu.core_type = #tpu.core_type<tc>} {
    %cst = arith.constant 0.000000e+00 : f32
    %0 = vector.broadcast %cst : f32 to vector<8x32xf32>
    %c0 = arith.constant 0 : index
    %c0_0 = arith.constant 0 : index
    %1 = vector.load %arg0[%c0, %c0_0] : memref<64x32xf32, #tpu.memory_space<vmem>>, vector<64x32xf32>
    %c0_1 = arith.constant 0 : index
    %c0_2 = arith.constant 0 : index
    %2 = vector.load %arg1[%c0_1, %c0_2] : memref<32x128xf32, #tpu.memory_space<vmem>>, vector<32x128xf32>
    %cst_3 = arith.constant dense<0.000000e+00> : vector<64x128xf32>
    %3 = tpu.matmul %1, %2, %cst_3 {dimension_numbers = #tpu.dot_dimension_numbers<[1], [0], [0], [1], [0, 0, 1, 1], [], []>} : vector<64x32xf32>, vector<32x128xf32>, vector<64x128xf32> -> vector<64x128xf32>
    %c0_4 = arith.constant 0 : index
    %c0_5 = arith.constant 0 : index
    %4 = vector.load %arg3[%c0_4, %c0_5] : memref<1x128xf32, #tpu.memory_space<vmem>>, vector<1x128xf32>
    %5 = vector.broadcast %4 : vector<1x128xf32> to vector<64x128xf32>
    %6 = arith.addf %3, %5 : vector<64x128xf32>
    %c0_6 = arith.constant 0 : index
    %c0_7 = arith.constant 0 : index
    %7 = vector.load %arg10[%c0_6, %c0_7] : memref<64x128xf32, #tpu.memory_space<vmem>>, vector<64x128xf32>
    tpu.vector_store %arg10[%c0_6, %c0_7], %6 {strides = array<i32>} : memref<64x128xf32, #tpu.memory_space<vmem>>, vector<64x128xf32>,
    %c0_8 = arith.constant 0 : index
    %c0_9 = arith.constant 0 : index
    %8 = vector.load %arg2[%c0_8, %c0_9] : memref<32x128xf32, #tpu.memory_space<vmem>>, vector<32x128xf32>
    %c0_10 = arith.constant 0 : index
    %c0_11 = arith.constant 0 : index
    %9 = vector.load %arg4[%c0_10, %c0_11] : memref<32x128xf32, #tpu.memory_space<vmem>>, vector<32x128xf32>
    %c0_12 = arith.constant 0 : index
    %c0_13 = arith.constant 0 : index
    %10 = vector.load %arg5[%c0_12, %c0_13] : memref<32x128xf32, #tpu.memory_space<vmem>>, vector<32x128xf32>
    %c0_14 = arith.constant 0 : index
    %c0_15 = arith.constant 0 : index
    %11 = vector.load %arg6[%c0_14, %c0_15] : memref<1x128xf32, #tpu.memory_space<vmem>>, vector<1x128xf32>
    %12 = vector.shape_cast %11 : vector<1x128xf32> to vector<1x128xf32>
    %13 = vector.broadcast %12 : vector<1x128xf32> to vector<8x128xf32>
    %c0_16 = arith.constant 0 : index
    %c0_17 = arith.constant 0 : index
    %14 = vector.load %arg10[%c0_16, %c0_17] : memref<64x128xf32, #tpu.memory_space<vmem>>, vector<8x128xf32>
    %15 = vector.extract_strided_slice %14 {offsets = [0, 0], sizes = [8, 96], strides = [1, 1]} : vector<8x128xf32> to vector<8x96xf32>
    %16 = arith.negf %15 : vector<8x96xf32>
    %17 = math.exp %16 : vector<8x96xf32>
    %cst_18 = arith.constant 1.000000e+00 : f32
    %18 = vector.broadcast %cst_18 : f32 to vector<8x96xf32>
    %19 = arith.addf %18, %17 : vector<8x96xf32>
    %20 = arith.divf %18, %19 : vector<8x96xf32>
    %21 = vector.extract_strided_slice %14 {offsets = [0, 96], sizes = [8, 32], strides = [1, 1]} : vector<8x128xf32> to vector<8x32xf32>
    %22 = math.tanh %21 : vector<8x32xf32>
    %23 = vector.extract_strided_slice %20 {offsets = [0, 0], sizes = [8, 32], strides = [1, 1]} : vector<8x96xf32> to vector<8x32xf32>
    %24 = vector.extract_strided_slice %20 {offsets = [0, 32], sizes = [8, 32], strides = [1, 1]} : vector<8x96xf32> to vector<8x32xf32>
    %25 = vector.extract_strided_slice %20 {offsets = [0, 64], sizes = [8, 32], strides = [1, 1]} : vector<8x96xf32> to vector<8x32xf32>
    %26 = arith.mulf %24, %0 : vector<8x32xf32>
    %27 = arith.mulf %23, %22 : vector<8x32xf32>
    %28 = arith.addf %26, %27 : vector<8x32xf32>
    %29 = math.tanh %28 : vector<8x32xf32>
    %30 = arith.mulf %25, %29 : vector<8x32xf32>
    %c1_i32 = arith.constant 1 : i32
    %c8_i32 = arith.constant 8 : i32
    %31 = arith.muli %c1_i32, %c8_i32 : i32
    %32 = tpu.assume_multiple %31, 8 : i32
    %cst_19 = arith.constant dense<0.000000e+00> : vector<8x128xf32>
    %33 = tpu.matmul %30, %9, %cst_19 {dimension_numbers = #tpu.dot_dimension_numbers<[1], [0], [0], [1], [0, 0, 1, 1], [], []>} : vector<8x32xf32>, vector<32x128xf32>, vector<8x128xf32> -> vector<8x128xf32>
    %34 = arith.addf %13, %33 : vector<8x128xf32>
    %cst_20 = arith.constant dense<0.000000e+00> : vector<8x128xf32>
    %35 = tpu.matmul %0, %10, %cst_20 {dimension_numbers = #tpu.dot_dimension_numbers<[1], [0], [0], [1], [0, 0, 1, 1], [], []>} : vector<8x32xf32>, vector<32x128xf32>, vector<8x128xf32> -> vector<8x128xf32>
    %36 = arith.addf %34, %35 : vector<8x128xf32>
    %37 = arith.index_cast %32 : i32 to index
    %c0_21 = arith.constant 0 : index
    %38 = vector.load %arg10[%37, %c0_21] : memref<64x128xf32, #tpu.memory_space<vmem>>, vector<8x128xf32>
    %cst_22 = arith.constant dense<0.000000e+00> : vector<8x128xf32>
    %39 = tpu.matmul %30, %8, %cst_22 {dimension_numbers = #tpu.dot_dimension_numbers<[1], [0], [0], [1], [0, 0, 1, 1], [], []>} : vector<8x32xf32>, vector<32x128xf32>, vector<8x128xf32> -> vector<8x128xf32>
    %40 = arith.addf %38, %39 : vector<8x128xf32>
    %41 = vector.extract_strided_slice %36 {offsets = [0, 0], sizes = [8, 96], strides = [1, 1]} : vector<8x128xf32> to vector<8x96xf32>
    %42 = arith.negf %41 : vector<8x96xf32>
    %43 = math.exp %42 : vector<8x96xf32>
    %cst_23 = arith.constant 1.000000e+00 : f32
    %44 = vector.broadcast %cst_23 : f32 to vector<8x96xf32>
    %45 = arith.addf %44, %43 : vector<8x96xf32>
    %46 = arith.divf %44, %45 : vector<8x96xf32>
    %47 = vector.extract_strided_slice %36 {offsets = [0, 96], sizes = [8, 32], strides = [1, 1]} : vector<8x128xf32> to vector<8x32xf32>
    %48 = math.tanh %47 : vector<8x32xf32>
    %49 = vector.extract_strided_slice %46 {offsets = [0, 0], sizes = [8, 32], strides = [1, 1]} : vector<8x96xf32> to vector<8x32xf32>
    %50 = vector.extract_strided_slice %46 {offsets = [0, 32], sizes = [8, 32], strides = [1, 1]} : vector<8x96xf32> to vector<8x32xf32>
    %51 = vector.extract_strided_slice %46 {offsets = [0, 64], sizes = [8, 32], strides = [1, 1]} : vector<8x96xf32> to vector<8x32xf32>
    %52 = arith.mulf %50, %0 : vector<8x32xf32>
    %53 = arith.mulf %49, %48 : vector<8x32xf32>
    %54 = arith.addf %52, %53 : vector<8x32xf32>
    %55 = math.tanh %54 : vector<8x32xf32>
    %56 = arith.mulf %51, %55 : vector<8x32xf32>
    %57 = vector.extract_strided_slice %40 {offsets = [0, 0], sizes = [8, 96], strides = [1, 1]} : vector<8x128xf32> to vector<8x96xf32>
    %58 = arith.negf %57 : vector<8x96xf32>
    %59 = math.exp %58 : vector<8x96xf32>
    %cst_24 = arith.constant 1.000000e+00 : f32
    %60 = vector.broadcast %cst_24 : f32 to vector<8x96xf32>
    %61 = arith.addf %60, %59 : vector<8x96xf32>
    %62 = arith.divf %60, %61 : vector<8x96xf32>
    %63 = vector.extract_strided_slice %40 {offsets = [0, 96], sizes = [8, 32], strides = [1, 1]} : vector<8x128xf32> to vector<8x32xf32>
    %64 = math.tanh %63 : vector<8x32xf32>
    %65 = vector.extract_strided_slice %62 {offsets = [0, 0], sizes = [8, 32], strides = [1, 1]} : vector<8x96xf32> to vector<8x32xf32>
    %66 = vector.extract_strided_slice %62 {offsets = [0, 32], sizes = [8, 32], strides = [1, 1]} : vector<8x96xf32> to vector<8x32xf32>
    %67 = vector.extract_strided_slice %62 {offsets = [0, 64], sizes = [8, 32], strides = [1, 1]} : vector<8x96xf32> to vector<8x32xf32>
    %68 = arith.mulf %66, %28 : vector<8x32xf32>
    %69 = arith.mulf %65, %64 : vector<8x32xf32>
    %70 = arith.addf %68, %69 : vector<8x32xf32>
    %71 = math.tanh %70 : vector<8x32xf32>
    %72 = arith.mulf %67, %71 : vector<8x32xf32>
    %c2_i32 = arith.constant 2 : i32
    %c8_i32_25 = arith.constant 8 : i32
    %73 = arith.muli %c2_i32, %c8_i32_25 : i32
    %74 = tpu.assume_multiple %73, 8 : i32
    %cst_26 = arith.constant dense<0.000000e+00> : vector<8x128xf32>
    %75 = tpu.matmul %72, %9, %cst_26 {dimension_numbers = #tpu.dot_dimension_numbers<[1], [0], [0], [1], [0, 0, 1, 1], [], []>} : vector<8x32xf32>, vector<32x128xf32>, vector<8x128xf32> -> vector<8x128xf32>
    %76 = arith.addf %13, %75 : vector<8x128xf32>
    %cst_27 = arith.constant dense<0.000000e+00> : vector<8x128xf32>
    %77 = tpu.matmul %56, %10, %cst_27 {dimension_numbers = #tpu.dot_dimension_numbers<[1], [0], [0], [1], [0, 0, 1, 1], [], []>} : vector<8x32xf32>, vector<32x128xf32>, vector<8x128xf32> -> vector<8x128xf32>
    %78 = arith.addf %76, %77 : vector<8x128xf32>
    %79 = arith.index_cast %74 : i32 to index
    %c0_28 = arith.constant 0 : index
    %80 = vector.load %arg10[%79, %c0_28] : memref<64x128xf32, #tpu.memory_space<vmem>>, vector<8x128xf32>
    %cst_29 = arith.constant dense<0.000000e+00> : vector<8x128xf32>
    %81 = tpu.matmul %72, %8, %cst_29 {dimension_numbers = #tpu.dot_dimension_numbers<[1], [0], [0], [1], [0, 0, 1, 1], [], []>} : vector<8x32xf32>, vector<32x128xf32>, vector<8x128xf32> -> vector<8x128xf32>
    %82 = arith.addf %80, %81 : vector<8x128xf32>
    %83 = vector.extract_strided_slice %78 {offsets = [0, 0], sizes = [8, 96], strides = [1, 1]} : vector<8x128xf32> to vector<8x96xf32>
    %84 = arith.negf %83 : vector<8x96xf32>
    %85 = math.exp %84 : vector<8x96xf32>
    %cst_30 = arith.constant 1.000000e+00 : f32
    %86 = vector.broadcast %cst_30 : f32 to vector<8x96xf32>
    %87 = arith.addf %86, %85 : vector<8x96xf32>
    %88 = arith.divf %86, %87 : vector<8x96xf32>
    %89 = vector.extract_strided_slice %78 {offsets = [0, 96], sizes = [8, 32], strides = [1, 1]} : vector<8x128xf32> to vector<8x32xf32>
    %90 = math.tanh %89 : vector<8x32xf32>
    %91 = vector.extract_strided_slice %88 {offsets = [0, 0], sizes = [8, 32], strides = [1, 1]} : vector<8x96xf32> to vector<8x32xf32>
    %92 = vector.extract_strided_slice %88 {offsets = [0, 32], sizes = [8, 32], strides = [1, 1]} : vector<8x96xf32> to vector<8x32xf32>
    %93 = vector.extract_strided_slice %88 {offsets = [0, 64], sizes = [8, 32], strides = [1, 1]} : vector<8x96xf32> to vector<8x32xf32>
    %94 = arith.mulf %92, %54 : vector<8x32xf32>
    %95 = arith.mulf %91, %90 : vector<8x32xf32>
    %96 = arith.addf %94, %95 : vector<8x32xf32>
    %97 = math.tanh %96 : vector<8x32xf32>
    %98 = arith.mulf %93, %97 : vector<8x32xf32>
    %99 = vector.extract_strided_slice %82 {offsets = [0, 0], sizes = [8, 96], strides = [1, 1]} : vector<8x128xf32> to vector<8x96xf32>
    %100 = arith.negf %99 : vector<8x96xf32>
    %101 = math.exp %100 : vector<8x96xf32>
    %cst_31 = arith.constant 1.000000e+00 : f32
    %102 = vector.broadcast %cst_31 : f32 to vector<8x96xf32>
    %103 = arith.addf %102, %101 : vector<8x96xf32>
    %104 = arith.divf %102, %103 : vector<8x96xf32>
    %105 = vector.extract_strided_slice %82 {offsets = [0, 96], sizes = [8, 32], strides = [1, 1]} : vector<8x128xf32> to vector<8x32xf32>
    %106 = math.tanh %105 : vector<8x32xf32>
    %107 = vector.extract_strided_slice %104 {offsets = [0, 0], sizes = [8, 32], strides = [1, 1]} : vector<8x96xf32> to vector<8x32xf32>
    %108 = vector.extract_strided_slice %104 {offsets = [0, 32], sizes = [8, 32], strides = [1, 1]} : vector<8x96xf32> to vector<8x32xf32>
    %109 = vector.extract_strided_slice %104 {offsets = [0, 64], sizes = [8, 32], strides = [1, 1]} : vector<8x96xf32> to vector<8x32xf32>
    %110 = arith.mulf %108, %70 : vector<8x32xf32>
    %111 = arith.mulf %107, %106 : vector<8x32xf32>
    %112 = arith.addf %110, %111 : vector<8x32xf32>
    %113 = math.tanh %112 : vector<8x32xf32>
    %114 = arith.mulf %109, %113 : vector<8x32xf32>
    %c3_i32 = arith.constant 3 : i32
    %c8_i32_32 = arith.constant 8 : i32
    %115 = arith.muli %c3_i32, %c8_i32_32 : i32
    %116 = tpu.assume_multiple %115, 8 : i32
    %cst_33 = arith.constant dense<0.000000e+00> : vector<8x128xf32>
    %117 = tpu.matmul %114, %9, %cst_33 {dimension_numbers = #tpu.dot_dimension_numbers<[1], [0], [0], [1], [0, 0, 1, 1], [], []>} : vector<8x32xf32>, vector<32x128xf32>, vector<8x128xf32> -> vector<8x128xf32>
    %118 = arith.addf %13, %117 : vector<8x128xf32>
    %cst_34 = arith.constant dense<0.000000e+00> : vector<8x128xf32>
    %119 = tpu.matmul %98, %10, %cst_34 {dimension_numbers = #tpu.dot_dimension_numbers<[1], [0], [0], [1], [0, 0, 1, 1], [], []>} : vector<8x32xf32>, vector<32x128xf32>, vector<8x128xf32> -> vector<8x128xf32>
    %120 = arith.addf %118, %119 : vector<8x128xf32>
    %121 = arith.index_cast %116 : i32 to index
    %c0_35 = arith.constant 0 : index
    %122 = vector.load %arg10[%121, %c0_35] : memref<64x128xf32, #tpu.memory_space<vmem>>, vector<8x128xf32>
    %cst_36 = arith.constant dense<0.000000e+00> : vector<8x128xf32>
    %123 = tpu.matmul %114, %8, %cst_36 {dimension_numbers = #tpu.dot_dimension_numbers<[1], [0], [0], [1], [0, 0, 1, 1], [], []>} : vector<8x32xf32>, vector<32x128xf32>, vector<8x128xf32> -> vector<8x128xf32>
    %124 = arith.addf %122, %123 : vector<8x128xf32>
    %125 = vector.extract_strided_slice %120 {offsets = [0, 0], sizes = [8, 96], strides = [1, 1]} : vector<8x128xf32> to vector<8x96xf32>
    %126 = arith.negf %125 : vector<8x96xf32>
    %127 = math.exp %126 : vector<8x96xf32>
    %cst_37 = arith.constant 1.000000e+00 : f32
    %128 = vector.broadcast %cst_37 : f32 to vector<8x96xf32>
    %129 = arith.addf %128, %127 : vector<8x96xf32>
    %130 = arith.divf %128, %129 : vector<8x96xf32>
    %131 = vector.extract_strided_slice %120 {offsets = [0, 96], sizes = [8, 32], strides = [1, 1]} : vector<8x128xf32> to vector<8x32xf32>
    %132 = math.tanh %131 : vector<8x32xf32>
    %133 = vector.extract_strided_slice %130 {offsets = [0, 0], sizes = [8, 32], strides = [1, 1]} : vector<8x96xf32> to vector<8x32xf32>
    %134 = vector.extract_strided_slice %130 {offsets = [0, 32], sizes = [8, 32], strides = [1, 1]} : vector<8x96xf32> to vector<8x32xf32>
    %135 = vector.extract_strided_slice %130 {offsets = [0, 64], sizes = [8, 32], strides = [1, 1]} : vector<8x96xf32> to vector<8x32xf32>
    %136 = arith.mulf %134, %96 : vector<8x32xf32>
    %137 = arith.mulf %133, %132 : vector<8x32xf32>
    %138 = arith.addf %136, %137 : vector<8x32xf32>
    %139 = math.tanh %138 : vector<8x32xf32>
    %140 = arith.mulf %135, %139 : vector<8x32xf32>
    %141 = vector.extract_strided_slice %124 {offsets = [0, 0], sizes = [8, 96], strides = [1, 1]} : vector<8x128xf32> to vector<8x96xf32>
    %142 = arith.negf %141 : vector<8x96xf32>
    %143 = math.exp %142 : vector<8x96xf32>
    %cst_38 = arith.constant 1.000000e+00 : f32
    %144 = vector.broadcast %cst_38 : f32 to vector<8x96xf32>
    %145 = arith.addf %144, %143 : vector<8x96xf32>
    %146 = arith.divf %144, %145 : vector<8x96xf32>
    %147 = vector.extract_strided_slice %124 {offsets = [0, 96], sizes = [8, 32], strides = [1, 1]} : vector<8x128xf32> to vector<8x32xf32>
    %148 = math.tanh %147 : vector<8x32xf32>
    %149 = vector.extract_strided_slice %146 {offsets = [0, 0], sizes = [8, 32], strides = [1, 1]} : vector<8x96xf32> to vector<8x32xf32>
    %150 = vector.extract_strided_slice %146 {offsets = [0, 32], sizes = [8, 32], strides = [1, 1]} : vector<8x96xf32> to vector<8x32xf32>
    %151 = vector.extract_strided_slice %146 {offsets = [0, 64], sizes = [8, 32], strides = [1, 1]} : vector<8x96xf32> to vector<8x32xf32>
    %152 = arith.mulf %150, %112 : vector<8x32xf32>
    %153 = arith.mulf %149, %148 : vector<8x32xf32>
    %154 = arith.addf %152, %153 : vector<8x32xf32>
    %155 = math.tanh %154 : vector<8x32xf32>
    %156 = arith.mulf %151, %155 : vector<8x32xf32>
    %c4_i32 = arith.constant 4 : i32
    %c8_i32_39 = arith.constant 8 : i32
    %157 = arith.muli %c4_i32, %c8_i32_39 : i32
    %158 = tpu.assume_multiple %157, 8 : i32
    %cst_40 = arith.constant dense<0.000000e+00> : vector<8x128xf32>
    %159 = tpu.matmul %156, %9, %cst_40 {dimension_numbers = #tpu.dot_dimension_numbers<[1], [0], [0], [1], [0, 0, 1, 1], [], []>} : vector<8x32xf32>, vector<32x128xf32>, vector<8x128xf32> -> vector<8x128xf32>
    %160 = arith.addf %13, %159 : vector<8x128xf32>
    %cst_41 = arith.constant dense<0.000000e+00> : vector<8x128xf32>
    %161 = tpu.matmul %140, %10, %cst_41 {dimension_numbers = #tpu.dot_dimension_numbers<[1], [0], [0], [1], [0, 0, 1, 1], [], []>} : vector<8x32xf32>, vector<32x128xf32>, vector<8x128xf32> -> vector<8x128xf32>
    %162 = arith.addf %160, %161 : vector<8x128xf32>
    %163 = arith.index_cast %158 : i32 to index
    %c0_42 = arith.constant 0 : index
    %164 = vector.load %arg10[%163, %c0_42] : memref<64x128xf32, #tpu.memory_space<vmem>>, vector<8x128xf32>
    %cst_43 = arith.constant dense<0.000000e+00> : vector<8x128xf32>
    %165 = tpu.matmul %156, %8, %cst_43 {dimension_numbers = #tpu.dot_dimension_numbers<[1], [0], [0], [1], [0, 0, 1, 1], [], []>} : vector<8x32xf32>, vector<32x128xf32>, vector<8x128xf32> -> vector<8x128xf32>
    %166 = arith.addf %164, %165 : vector<8x128xf32>
    %167 = vector.extract_strided_slice %162 {offsets = [0, 0], sizes = [8, 96], strides = [1, 1]} : vector<8x128xf32> to vector<8x96xf32>
    %168 = arith.negf %167 : vector<8x96xf32>
    %169 = math.exp %168 : vector<8x96xf32>
    %cst_44 = arith.constant 1.000000e+00 : f32
    %170 = vector.broadcast %cst_44 : f32 to vector<8x96xf32>
    %171 = arith.addf %170, %169 : vector<8x96xf32>
    %172 = arith.divf %170, %171 : vector<8x96xf32>
    %173 = vector.extract_strided_slice %162 {offsets = [0, 96], sizes = [8, 32], strides = [1, 1]} : vector<8x128xf32> to vector<8x32xf32>
    %174 = math.tanh %173 : vector<8x32xf32>
    %175 = vector.extract_strided_slice %172 {offsets = [0, 0], sizes = [8, 32], strides = [1, 1]} : vector<8x96xf32> to vector<8x32xf32>
    %176 = vector.extract_strided_slice %172 {offsets = [0, 32], sizes = [8, 32], strides = [1, 1]} : vector<8x96xf32> to vector<8x32xf32>
    %177 = vector.extract_strided_slice %172 {offsets = [0, 64], sizes = [8, 32], strides = [1, 1]} : vector<8x96xf32> to vector<8x32xf32>
    %178 = arith.mulf %176, %138 : vector<8x32xf32>
    %179 = arith.mulf %175, %174 : vector<8x32xf32>
    %180 = arith.addf %178, %179 : vector<8x32xf32>
    %181 = math.tanh %180 : vector<8x32xf32>
    %182 = arith.mulf %177, %181 : vector<8x32xf32>
    %183 = vector.extract_strided_slice %166 {offsets = [0, 0], sizes = [8, 96], strides = [1, 1]} : vector<8x128xf32> to vector<8x96xf32>
    %184 = arith.negf %183 : vector<8x96xf32>
    %185 = math.exp %184 : vector<8x96xf32>
    %cst_45 = arith.constant 1.000000e+00 : f32
    %186 = vector.broadcast %cst_45 : f32 to vector<8x96xf32>
    %187 = arith.addf %186, %185 : vector<8x96xf32>
    %188 = arith.divf %186, %187 : vector<8x96xf32>
    %189 = vector.extract_strided_slice %166 {offsets = [0, 96], sizes = [8, 32], strides = [1, 1]} : vector<8x128xf32> to vector<8x32xf32>
    %190 = math.tanh %189 : vector<8x32xf32>
    %191 = vector.extract_strided_slice %188 {offsets = [0, 0], sizes = [8, 32], strides = [1, 1]} : vector<8x96xf32> to vector<8x32xf32>
    %192 = vector.extract_strided_slice %188 {offsets = [0, 32], sizes = [8, 32], strides = [1, 1]} : vector<8x96xf32> to vector<8x32xf32>
    %193 = vector.extract_strided_slice %188 {offsets = [0, 64], sizes = [8, 32], strides = [1, 1]} : vector<8x96xf32> to vector<8x32xf32>
    %194 = arith.mulf %192, %154 : vector<8x32xf32>
    %195 = arith.mulf %191, %190 : vector<8x32xf32>
    %196 = arith.addf %194, %195 : vector<8x32xf32>
    %197 = math.tanh %196 : vector<8x32xf32>
    %198 = arith.mulf %193, %197 : vector<8x32xf32>
    %c5_i32 = arith.constant 5 : i32
    %c8_i32_46 = arith.constant 8 : i32
    %199 = arith.muli %c5_i32, %c8_i32_46 : i32
    %200 = tpu.assume_multiple %199, 8 : i32
    %cst_47 = arith.constant dense<0.000000e+00> : vector<8x128xf32>
    %201 = tpu.matmul %198, %9, %cst_47 {dimension_numbers = #tpu.dot_dimension_numbers<[1], [0], [0], [1], [0, 0, 1, 1], [], []>} : vector<8x32xf32>, vector<32x128xf32>, vector<8x128xf32> -> vector<8x128xf32>
    %202 = arith.addf %13, %201 : vector<8x128xf32>
    %cst_48 = arith.constant dense<0.000000e+00> : vector<8x128xf32>
    %203 = tpu.matmul %182, %10, %cst_48 {dimension_numbers = #tpu.dot_dimension_numbers<[1], [0], [0], [1], [0, 0, 1, 1], [], []>} : vector<8x32xf32>, vector<32x128xf32>, vector<8x128xf32> -> vector<8x128xf32>
    %204 = arith.addf %202, %203 : vector<8x128xf32>
    %205 = arith.index_cast %200 : i32 to index
    %c0_49 = arith.constant 0 : index
    %206 = vector.load %arg10[%205, %c0_49] : memref<64x128xf32, #tpu.memory_space<vmem>>, vector<8x128xf32>
    %cst_50 = arith.constant dense<0.000000e+00> : vector<8x128xf32>
    %207 = tpu.matmul %198, %8, %cst_50 {dimension_numbers = #tpu.dot_dimension_numbers<[1], [0], [0], [1], [0, 0, 1, 1], [], []>} : vector<8x32xf32>, vector<32x128xf32>, vector<8x128xf32> -> vector<8x128xf32>
    %208 = arith.addf %206, %207 : vector<8x128xf32>
    %209 = vector.extract_strided_slice %204 {offsets = [0, 0], sizes = [8, 96], strides = [1, 1]} : vector<8x128xf32> to vector<8x96xf32>
    %210 = arith.negf %209 : vector<8x96xf32>
    %211 = math.exp %210 : vector<8x96xf32>
    %cst_51 = arith.constant 1.000000e+00 : f32
    %212 = vector.broadcast %cst_51 : f32 to vector<8x96xf32>
    %213 = arith.addf %212, %211 : vector<8x96xf32>
    %214 = arith.divf %212, %213 : vector<8x96xf32>
    %215 = vector.extract_strided_slice %204 {offsets = [0, 96], sizes = [8, 32], strides = [1, 1]} : vector<8x128xf32> to vector<8x32xf32>
    %216 = math.tanh %215 : vector<8x32xf32>
    %217 = vector.extract_strided_slice %214 {offsets = [0, 0], sizes = [8, 32], strides = [1, 1]} : vector<8x96xf32> to vector<8x32xf32>
    %218 = vector.extract_strided_slice %214 {offsets = [0, 32], sizes = [8, 32], strides = [1, 1]} : vector<8x96xf32> to vector<8x32xf32>
    %219 = vector.extract_strided_slice %214 {offsets = [0, 64], sizes = [8, 32], strides = [1, 1]} : vector<8x96xf32> to vector<8x32xf32>
    %220 = arith.mulf %218, %180 : vector<8x32xf32>
    %221 = arith.mulf %217, %216 : vector<8x32xf32>
    %222 = arith.addf %220, %221 : vector<8x32xf32>
    %223 = math.tanh %222 : vector<8x32xf32>
    %224 = arith.mulf %219, %223 : vector<8x32xf32>
    %225 = vector.extract_strided_slice %208 {offsets = [0, 0], sizes = [8, 96], strides = [1, 1]} : vector<8x128xf32> to vector<8x96xf32>
    %226 = arith.negf %225 : vector<8x96xf32>
    %227 = math.exp %226 : vector<8x96xf32>
    %cst_52 = arith.constant 1.000000e+00 : f32
    %228 = vector.broadcast %cst_52 : f32 to vector<8x96xf32>
    %229 = arith.addf %228, %227 : vector<8x96xf32>
    %230 = arith.divf %228, %229 : vector<8x96xf32>
    %231 = vector.extract_strided_slice %208 {offsets = [0, 96], sizes = [8, 32], strides = [1, 1]} : vector<8x128xf32> to vector<8x32xf32>
    %232 = math.tanh %231 : vector<8x32xf32>
    %233 = vector.extract_strided_slice %230 {offsets = [0, 0], sizes = [8, 32], strides = [1, 1]} : vector<8x96xf32> to vector<8x32xf32>
    %234 = vector.extract_strided_slice %230 {offsets = [0, 32], sizes = [8, 32], strides = [1, 1]} : vector<8x96xf32> to vector<8x32xf32>
    %235 = vector.extract_strided_slice %230 {offsets = [0, 64], sizes = [8, 32], strides = [1, 1]} : vector<8x96xf32> to vector<8x32xf32>
    %236 = arith.mulf %234, %196 : vector<8x32xf32>
    %237 = arith.mulf %233, %232 : vector<8x32xf32>
    %238 = arith.addf %236, %237 : vector<8x32xf32>
    %239 = math.tanh %238 : vector<8x32xf32>
    %240 = arith.mulf %235, %239 : vector<8x32xf32>
    %c6_i32 = arith.constant 6 : i32
    %c8_i32_53 = arith.constant 8 : i32
    %241 = arith.muli %c6_i32, %c8_i32_53 : i32
    %242 = tpu.assume_multiple %241, 8 : i32
    %cst_54 = arith.constant dense<0.000000e+00> : vector<8x128xf32>
    %243 = tpu.matmul %240, %9, %cst_54 {dimension_numbers = #tpu.dot_dimension_numbers<[1], [0], [0], [1], [0, 0, 1, 1], [], []>} : vector<8x32xf32>, vector<32x128xf32>, vector<8x128xf32> -> vector<8x128xf32>
    %244 = arith.addf %13, %243 : vector<8x128xf32>
    %cst_55 = arith.constant dense<0.000000e+00> : vector<8x128xf32>
    %245 = tpu.matmul %224, %10, %cst_55 {dimension_numbers = #tpu.dot_dimension_numbers<[1], [0], [0], [1], [0, 0, 1, 1], [], []>} : vector<8x32xf32>, vector<32x128xf32>, vector<8x128xf32> -> vector<8x128xf32>
    %246 = arith.addf %244, %245 : vector<8x128xf32>
    %247 = arith.index_cast %242 : i32 to index
    %c0_56 = arith.constant 0 : index
    %248 = vector.load %arg10[%247, %c0_56] : memref<64x128xf32, #tpu.memory_space<vmem>>, vector<8x128xf32>
    %cst_57 = arith.constant dense<0.000000e+00> : vector<8x128xf32>
    %249 = tpu.matmul %240, %8, %cst_57 {dimension_numbers = #tpu.dot_dimension_numbers<[1], [0], [0], [1], [0, 0, 1, 1], [], []>} : vector<8x32xf32>, vector<32x128xf32>, vector<8x128xf32> -> vector<8x128xf32>
    %250 = arith.addf %248, %249 : vector<8x128xf32>
    %251 = vector.extract_strided_slice %246 {offsets = [0, 0], sizes = [8, 96], strides = [1, 1]} : vector<8x128xf32> to vector<8x96xf32>
    %252 = arith.negf %251 : vector<8x96xf32>
    %253 = math.exp %252 : vector<8x96xf32>
    %cst_58 = arith.constant 1.000000e+00 : f32
    %254 = vector.broadcast %cst_58 : f32 to vector<8x96xf32>
    %255 = arith.addf %254, %253 : vector<8x96xf32>
    %256 = arith.divf %254, %255 : vector<8x96xf32>
    %257 = vector.extract_strided_slice %246 {offsets = [0, 96], sizes = [8, 32], strides = [1, 1]} : vector<8x128xf32> to vector<8x32xf32>
    %258 = math.tanh %257 : vector<8x32xf32>
    %259 = vector.extract_strided_slice %256 {offsets = [0, 0], sizes = [8, 32], strides = [1, 1]} : vector<8x96xf32> to vector<8x32xf32>
    %260 = vector.extract_strided_slice %256 {offsets = [0, 32], sizes = [8, 32], strides = [1, 1]} : vector<8x96xf32> to vector<8x32xf32>
    %261 = vector.extract_strided_slice %256 {offsets = [0, 64], sizes = [8, 32], strides = [1, 1]} : vector<8x96xf32> to vector<8x32xf32>
    %262 = arith.mulf %260, %222 : vector<8x32xf32>
    %263 = arith.mulf %259, %258 : vector<8x32xf32>
    %264 = arith.addf %262, %263 : vector<8x32xf32>
    %265 = math.tanh %264 : vector<8x32xf32>
    %266 = arith.mulf %261, %265 : vector<8x32xf32>
    %267 = vector.extract_strided_slice %250 {offsets = [0, 0], sizes = [8, 96], strides = [1, 1]} : vector<8x128xf32> to vector<8x96xf32>
    %268 = arith.negf %267 : vector<8x96xf32>
    %269 = math.exp %268 : vector<8x96xf32>
    %cst_59 = arith.constant 1.000000e+00 : f32
    %270 = vector.broadcast %cst_59 : f32 to vector<8x96xf32>
    %271 = arith.addf %270, %269 : vector<8x96xf32>
    %272 = arith.divf %270, %271 : vector<8x96xf32>
    %273 = vector.extract_strided_slice %250 {offsets = [0, 96], sizes = [8, 32], strides = [1, 1]} : vector<8x128xf32> to vector<8x32xf32>
    %274 = math.tanh %273 : vector<8x32xf32>
    %275 = vector.extract_strided_slice %272 {offsets = [0, 0], sizes = [8, 32], strides = [1, 1]} : vector<8x96xf32> to vector<8x32xf32>
    %276 = vector.extract_strided_slice %272 {offsets = [0, 32], sizes = [8, 32], strides = [1, 1]} : vector<8x96xf32> to vector<8x32xf32>
    %277 = vector.extract_strided_slice %272 {offsets = [0, 64], sizes = [8, 32], strides = [1, 1]} : vector<8x96xf32> to vector<8x32xf32>
    %278 = arith.mulf %276, %238 : vector<8x32xf32>
    %279 = arith.mulf %275, %274 : vector<8x32xf32>
    %280 = arith.addf %278, %279 : vector<8x32xf32>
    %281 = math.tanh %280 : vector<8x32xf32>
    %282 = arith.mulf %277, %281 : vector<8x32xf32>
    %c7_i32 = arith.constant 7 : i32
    %c8_i32_60 = arith.constant 8 : i32
    %283 = arith.muli %c7_i32, %c8_i32_60 : i32
    %284 = tpu.assume_multiple %283, 8 : i32
    %cst_61 = arith.constant dense<0.000000e+00> : vector<8x128xf32>
    %285 = tpu.matmul %282, %9, %cst_61 {dimension_numbers = #tpu.dot_dimension_numbers<[1], [0], [0], [1], [0, 0, 1, 1], [], []>} : vector<8x32xf32>, vector<32x128xf32>, vector<8x128xf32> -> vector<8x128xf32>
    %286 = arith.addf %13, %285 : vector<8x128xf32>
    %cst_62 = arith.constant dense<0.000000e+00> : vector<8x128xf32>
    %287 = tpu.matmul %266, %10, %cst_62 {dimension_numbers = #tpu.dot_dimension_numbers<[1], [0], [0], [1], [0, 0, 1, 1], [], []>} : vector<8x32xf32>, vector<32x128xf32>, vector<8x128xf32> -> vector<8x128xf32>
    %288 = arith.addf %286, %287 : vector<8x128xf32>
    %289 = arith.index_cast %284 : i32 to index
    %c0_63 = arith.constant 0 : index
    %290 = vector.load %arg10[%289, %c0_63] : memref<64x128xf32, #tpu.memory_space<vmem>>, vector<8x128xf32>
    %cst_64 = arith.constant dense<0.000000e+00> : vector<8x128xf32>
    %291 = tpu.matmul %282, %8, %cst_64 {dimension_numbers = #tpu.dot_dimension_numbers<[1], [0], [0], [1], [0, 0, 1, 1], [], []>} : vector<8x32xf32>, vector<32x128xf32>, vector<8x128xf32> -> vector<8x128xf32>
    %292 = arith.addf %290, %291 : vector<8x128xf32>
    %293 = vector.extract_strided_slice %288 {offsets = [0, 0], sizes = [8, 96], strides = [1, 1]} : vector<8x128xf32> to vector<8x96xf32>
    %294 = arith.negf %293 : vector<8x96xf32>
    %295 = math.exp %294 : vector<8x96xf32>
    %cst_65 = arith.constant 1.000000e+00 : f32
    %296 = vector.broadcast %cst_65 : f32 to vector<8x96xf32>
    %297 = arith.addf %296, %295 : vector<8x96xf32>
    %298 = arith.divf %296, %297 : vector<8x96xf32>
    %299 = vector.extract_strided_slice %288 {offsets = [0, 96], sizes = [8, 32], strides = [1, 1]} : vector<8x128xf32> to vector<8x32xf32>
    %300 = math.tanh %299 : vector<8x32xf32>
    %301 = vector.extract_strided_slice %298 {offsets = [0, 0], sizes = [8, 32], strides = [1, 1]} : vector<8x96xf32> to vector<8x32xf32>
    %302 = vector.extract_strided_slice %298 {offsets = [0, 32], sizes = [8, 32], strides = [1, 1]} : vector<8x96xf32> to vector<8x32xf32>
    %303 = vector.extract_strided_slice %298 {offsets = [0, 64], sizes = [8, 32], strides = [1, 1]} : vector<8x96xf32> to vector<8x32xf32>
    %304 = arith.mulf %302, %264 : vector<8x32xf32>
    %305 = arith.mulf %301, %300 : vector<8x32xf32>
    %306 = arith.addf %304, %305 : vector<8x32xf32>
    %307 = math.tanh %306 : vector<8x32xf32>
    %308 = arith.mulf %303, %307 : vector<8x32xf32>
    %309 = vector.extract_strided_slice %292 {offsets = [0, 0], sizes = [8, 96], strides = [1, 1]} : vector<8x128xf32> to vector<8x96xf32>
    %310 = arith.negf %309 : vector<8x96xf32>
    %311 = math.exp %310 : vector<8x96xf32>
    %cst_66 = arith.constant 1.000000e+00 : f32
    %312 = vector.broadcast %cst_66 : f32 to vector<8x96xf32>
    %313 = arith.addf %312, %311 : vector<8x96xf32>
    %314 = arith.divf %312, %313 : vector<8x96xf32>
    %315 = vector.extract_strided_slice %292 {offsets = [0, 96], sizes = [8, 32], strides = [1, 1]} : vector<8x128xf32> to vector<8x32xf32>
    %316 = math.tanh %315 : vector<8x32xf32>
    %317 = vector.extract_strided_slice %314 {offsets = [0, 0], sizes = [8, 32], strides = [1, 1]} : vector<8x96xf32> to vector<8x32xf32>
    %318 = vector.extract_strided_slice %314 {offsets = [0, 32], sizes = [8, 32], strides = [1, 1]} : vector<8x96xf32> to vector<8x32xf32>
    %319 = vector.extract_strided_slice %314 {offsets = [0, 64], sizes = [8, 32], strides = [1, 1]} : vector<8x96xf32> to vector<8x32xf32>
    %320 = arith.mulf %318, %280 : vector<8x32xf32>
    %321 = arith.mulf %317, %316 : vector<8x32xf32>
    %322 = arith.addf %320, %321 : vector<8x32xf32>
    %323 = math.tanh %322 : vector<8x32xf32>
    %324 = arith.mulf %319, %323 : vector<8x32xf32>
    %c7_i32_67 = arith.constant 7 : i32
    %cst_68 = arith.constant dense<0.000000e+00> : vector<8x128xf32>
    %325 = tpu.matmul %324, %9, %cst_68 {dimension_numbers = #tpu.dot_dimension_numbers<[1], [0], [0], [1], [0, 0, 1, 1], [], []>} : vector<8x32xf32>, vector<32x128xf32>, vector<8x128xf32> -> vector<8x128xf32>
    %326 = arith.addf %13, %325 : vector<8x128xf32>
    %cst_69 = arith.constant dense<0.000000e+00> : vector<8x128xf32>
    %327 = tpu.matmul %308, %10, %cst_69 {dimension_numbers = #tpu.dot_dimension_numbers<[1], [0], [0], [1], [0, 0, 1, 1], [], []>} : vector<8x32xf32>, vector<32x128xf32>, vector<8x128xf32> -> vector<8x128xf32>
    %328 = arith.addf %326, %327 : vector<8x128xf32>
    %329 = vector.extract_strided_slice %328 {offsets = [0, 0], sizes = [8, 96], strides = [1, 1]} : vector<8x128xf32> to vector<8x96xf32>
    %330 = arith.negf %329 : vector<8x96xf32>
    %331 = math.exp %330 : vector<8x96xf32>
    %cst_70 = arith.constant 1.000000e+00 : f32
    %332 = vector.broadcast %cst_70 : f32 to vector<8x96xf32>
    %333 = arith.addf %332, %331 : vector<8x96xf32>
    %334 = arith.divf %332, %333 : vector<8x96xf32>
    %335 = vector.extract_strided_slice %328 {offsets = [0, 96], sizes = [8, 32], strides = [1, 1]} : vector<8x128xf32> to vector<8x32xf32>
    %336 = math.tanh %335 : vector<8x32xf32>
    %337 = vector.extract_strided_slice %334 {offsets = [0, 0], sizes = [8, 32], strides = [1, 1]} : vector<8x96xf32> to vector<8x32xf32>
    %338 = vector.extract_strided_slice %334 {offsets = [0, 32], sizes = [8, 32], strides = [1, 1]} : vector<8x96xf32> to vector<8x32xf32>
    %339 = vector.extract_strided_slice %334 {offsets = [0, 64], sizes = [8, 32], strides = [1, 1]} : vector<8x96xf32> to vector<8x32xf32>
    %340 = arith.mulf %338, %306 : vector<8x32xf32>
    %341 = arith.mulf %337, %336 : vector<8x32xf32>
    %342 = arith.addf %340, %341 : vector<8x32xf32>
    %343 = math.tanh %342 : vector<8x32xf32>
    %344 = arith.mulf %339, %343 : vector<8x32xf32>
    %c0_71 = arith.constant 0 : index
    %c0_72 = arith.constant 0 : index
    %345 = vector.load %arg7[%c0_71, %c0_72] : memref<32x10xf32, #tpu.memory_space<vmem>>, vector<32x10xf32>
    %cst_73 = arith.constant dense<0.000000e+00> : vector<8x10xf32>
    %346 = tpu.matmul %344, %345, %cst_73 {dimension_numbers = #tpu.dot_dimension_numbers<[1], [0], [0], [1], [0, 0, 1, 1], [], []>} : vector<8x32xf32>, vector<32x10xf32>, vector<8x10xf32> -> vector<8x10xf32>
    %c0_74 = arith.constant 0 : index
    %c0_75 = arith.constant 0 : index
    %347 = vector.load %arg8[%c0_74, %c0_75] : memref<1x10xf32, #tpu.memory_space<vmem>>, vector<1x10xf32>
    %348 = vector.broadcast %347 : vector<1x10xf32> to vector<8x10xf32>
    %349 = arith.addf %346, %348 : vector<8x10xf32>
    %c0_76 = arith.constant 0 : index
    %c0_77 = arith.constant 0 : index
    %350 = vector.load %arg9[%c0_76, %c0_77] : memref<8x10xf32, #tpu.memory_space<vmem>>, vector<8x10xf32>
    tpu.vector_store %arg9[%c0_76, %c0_77], %349 {strides = array<i32>} : memref<8x10xf32, #tpu.memory_space<vmem>>, vector<8x10xf32>,
    return
  }
}

</mosaic_0001>

<bundles_post_ra>
// kernel: tpu_custom_call.1
= control target key start
LH: loop header
LB: loop body
LE: loop exit
PB: predicated region body
PF: predicated region fallthrough
CT: control target
= control target key end

     0   :  { %14 = vsyncpa [#allocation4], 0  ;;  %s2060_s0 = inlined_call_operand.vmem [shape: f32[64,32], index: 0, kind: input, shape index: {}]   ;;  %s2061_s1 = inlined_call_operand.vmem [shape: f32[32,128], index: 1, kind: input, shape index: {}]   ;;  %s2062_s2 = inlined_call_operand.vmem [shape: f32[32,128], index: 2, kind: input, shape index: {}]   ;;  %s2063_s3 = inlined_call_operand.vmem [shape: f32[1,128], index: 3, kind: input, shape index: {}]   ;;  %s2064_s4 = inlined_call_operand.vmem [shape: f32[32,128], index: 4, kind: input, shape index: {}]   ;;  %s2065_s5 = inlined_call_operand.hbm [shape: f32[32,128], index: 5, kind: input, shape index: {}]   ;;  %s2066_s6 = inlined_call_operand.vmem [shape: f32[1,128], index: 6, kind: input, shape index: {}]   ;;  %s2067_s7 = inlined_call_operand.vmem [shape: f32[32,10], index: 7, kind: input, shape index: {}]   ;;  %s2068_s8 = inlined_call_operand.vmem [shape: f32[1,10], index: 8, kind: input, shape index: {}]   ;;  %s2069_s9 = inlined_call_operand.hbm [shape: f32[8,10], index: 9, kind: output, shape index: {}]  }
   0x1   :  { %15 = vsyncpa [#allocation5], 0  ;;  %s30_s11 = sshll.u32 %s2065_s5, 4  ;;  %s1621_s12 = smov [#allocation3]   ;;  %s31_s11 = int_to_ptr.hbm [resolvable:$true] %s30_s11 }
   0x2   :  { %s32_s13 = sshll.u32 %s1621_s12, 4  ;;  %s1622_s14 = smov 128   ;;  %s33_s13 = int_to_ptr.vmem [resolvable:$true] %s32_s13 }
   0x3   :  { %s1623_s15 = smov 8  }
   0x4   :  { %38 = dma.hbm_to_vmem [thread:$0]  %s31_s11, 512, %s33_s13, [#allocation4], %s1622_s14, %s1622_s14, %s1623_s15  }
   0x5   :  { %1617 = dma.done.wait [#allocation4], 512  }
   0x6   :  { %1618 = vsyncadd [#allocation4], 4294966784  ;;  %v60_v0 = vld [vmem:[%s2061_s1 + $0x18] sm:$0xff]  ;;  %v59_v1 = vld [vmem:[%s2061_s1 + $0x10] sm:$0xff]  ;;  %vm65_vm0 = vcmask 261120   ;;  %v1625_v40 = vmov 0.0  }
   0x7   :  { %102 = vmatpush.msra.mxu0 %v60_v0  ;;  %v58_v2 = vld [vmem:[%s2061_s1 + $0x8] sm:$0xff]  ;;  %v57_v3 = vld [vmem:[%s2061_s1] sm:$0xff]  ;;  %s1624_s1 = smov 32   ;;  %v1709_v28 = vld [vmem:[#allocation3 + $0x18] sm:$0xff]  ;;  %s1627_s30 = smov [#allocation6]  }
   0x8   :  { %v49_v4 = vld [vmem:[%s2060_s0] sm:$0xff]  ;;  %v1711_v29 = vld [vmem:[#allocation3 + $0x10] sm:$0xff]  ;;  %v1716_v30 = vld [vmem:[%s2064_s4 + $0x18] sm:$0xff]  ;;  %234 = vmatpush.msra.mxu2 %v1709_v28  ;;  %s1363_s10 = sshll.u32 %s1627_s30, 4  ;;  %s1365_s13 = sshll.u32 %s2069_s9, 4  ;;  %s1364_s10 = int_to_ptr.vmem [resolvable:$true] %s1363_s10  ;;  %s1366_s13 = int_to_ptr.hbm [resolvable:$true] %s1365_s13 }
   0x9   :  { %103 = vmatpush.msra.mxu0 %v59_v1  ;;  %v1700_v5 = vld [vmem:[%s2063_s3] ss:$0 sm:$0xff]  ;;  %210 = vmatpush.msra.mxu1 %v1716_v30  ;;  %v1723_v31 = vld [vmem:[%s2062_s2 + $0x18] sm:$0xff]  ;;  %v1728_v32 = vld [vmem:[%s2064_s4 + $0x10] sm:$0xff] }
   0xa   :  { %v1730_v33 = vld [vmem:[#allocation3 + $0x8] sm:$0xff]  ;;  %257 = vmatpush.msra.mxu3 %v1723_v31  ;;  %v1736_v34 = vld [vmem:[%s2062_s2 + $0x10] sm:$0xff]  ;;  %235 = vmatpush.msra.mxu2 %v1711_v29  ;;  %v1750_v37 = vld [vmem:[#allocation3] sm:$0xff] }
   0xb   :  { %104 = vmatpush.msra.mxu0 %v58_v2  ;;  %v1741_v35 = vld [vmem:[%s2064_s4 + $0x8] sm:$0xff]  ;;  %211 = vmatpush.msra.mxu1 %v1728_v32  ;;  %v1756_v38 = vld [vmem:[%s2064_s4] sm:$0xff] }
   0xc   :  { %v1748_v36 = vld [vmem:[%s2062_s2 + $0x8] sm:$0xff]  ;;  %258 = vmatpush.msra.mxu3 %v1736_v34  ;;  %236 = vmatpush.msra.mxu2 %v1730_v33  ;;  %v1763_v39 = vld [vmem:[%s2062_s2] sm:$0xff]  ;;  %s1626_s2 = smov 64  }
   0xd   :  { %105 = vmatpush.msra.mxu0 %v57_v3  ;;  %212 = vmatpush.msra.mxu1 %v1741_v35  ;;  %v50_v43 = vld [vmem:[%s2060_s0 + $0x8] sm:$0xff]  ;;  %v1803_v45 = vld [vmem:[%s2066_s6] ss:$0 sm:$0xff] }
   0xe   :  { %1375 = vmatmul.msk.f32.vlgmr.msra.gmra.mxu0 %vm65_vm0, %v49_v4  ;;  %259 = vmatpush.msra.mxu3 %v1748_v36 }
   0xf   :  { %237 = vmatpush.msra.mxu2 %v1750_v37  ;;  %213 = vmatpush.msra.mxu1 %v1756_v38 }
  0x10   :  { %238 = vmatmul.f32.vlgmr.msra.gmra.mxu2 %v1625_v40  ;;  %260 = vmatpush.msra.mxu3 %v1763_v39 }
  0x11   :  { %383 = vmatpush.msrb.mxu2 %v1709_v28  ;;  %357 = vmatpush.msrb.mxu1 %v1716_v30 }
  0x12   :  { %406 = vmatpush.msrb.mxu3 %v1723_v31 }
  0x13   :  { %384 = vmatpush.msrb.mxu2 %v1711_v29  ;;  %358 = vmatpush.msrb.mxu1 %v1728_v32 }
  0x14   :  { %407 = vmatpush.msrb.mxu3 %v1736_v34 }
  0x15   :  { %385 = vmatpush.msrb.mxu2 %v1730_v33  ;;  %359 = vmatpush.msrb.mxu1 %v1741_v35 }
  0x16   :  { %408 = vmatpush.msrb.mxu3 %v1748_v36  ;;  %1376 = vmatmul.msk.f32.gmra.mxu0 %vm65_vm0, %v50_v43 }
  0x17   :  { %386 = vmatpush.msrb.mxu2 %v1750_v37  ;;  %360 = vmatpush.msrb.mxu1 %v1756_v38 }
  0x18   :  { %409 = vmatpush.msrb.mxu3 %v1763_v39 }
  0x19   :  { %532 = vmatpush.msra.mxu2 %v1709_v28 }
  0x1b   :  { %533 = vmatpush.msra.mxu2 %v1711_v29 }
  0x1d   :  { %534 = vmatpush.msra.mxu2 %v1730_v33 }
  0x1f   :  { %535 = vmatpush.msra.mxu2 %v1750_v37 }
  0x8b   :  { %v107_v6 = vpop.f32.mrf.mxu0 }
  0x8c   :  { %v108_v7 = vadd.f32 %v1700_v5, %v107_v6 }
  0x8e   :  { %1432 = vtanh.f32 %v108_v7  ;;  %v1383_v9 = vmul.f32 -1.442695, %v108_v7 }
  0x90   :  { %1434 = vpow2.f32 %v1383_v9 }
  0x93   :  { %v239_v47 = vpop.f32.mrf.mxu2  ;;  %v110_v49 = vpop.f32.mrf.mxu0 }
  0x94   :  { %v1433_v8 = vpop.eup %1432  ;;  %v111_v51 = vadd.f32 %v1700_v5, %v110_v49 }
  0x95   :  { %178 = vrot.lane.b32.xlu0 %v1433_v8, %s1624_s1 }
  0x96   :  { %v1435_v10 = vpop.eup %1434 }
  0x97   :  { %v159_v11 = vadd.f32 1.0, %v1435_v10 }
  0x99   :  { %1436 = vrcp.f32 %v159_v11  ;;  %v171_v17 = vand.u32 2147483648, %v159_v11  ;;  %vm165_vm2 = vweird.f32 %v159_v11  ;;  %v169_v18 = vand.u32 2147483647, %v159_v11 }
  0x9b   :  { %v172_v20 = vor.u32 1.1754944e-38, %v171_v17  ;;  %vm170_vm4 = vcmp.eq.f32.partialorder %v169_v18, 8.507059e+37 }
  0x9f   :  { %v1437_v12 = vpop.eup %1436 }
  0xa0   :  { %v161_v13 = vmul.f32 %v1437_v12, %v159_v11  ;;  %vm166_vm1 = vweird.f32 %v1437_v12 }
  0xa1   :  { %vm167_vm3 = vmor %vm165_vm2, %vm166_vm1 }
  0xa2   :  { %v162_v14 = vsub.f32 1.0, %v161_v13 }
  0xa4   :  { %v163_v15 = vmul.f32 %v1437_v12, %v162_v14 }
  0xa6   :  { %v164_v16 = vadd.f32 %v1437_v12, %v163_v15 }
  0xa8   :  { %v168_v19 = vsel %vm167_vm3, %v1437_v12, %v164_v16 }
  0xa9   :  { %v173_v22 = vsel %vm170_vm4, %v172_v20, %v168_v19 }
  0xaa   :  { %v176_v24 = vmul.f32 0.0, %v173_v22 }
 0x107   :  { %v179_v21 = vpop.permute.xlu0 %178 }
 0x108   :  { %v181_v23 = vmul.f32 %v179_v21, %v173_v22 }
 0x10a   :  { %183 = vrot.lane.b32.xlu0 %v181_v23, %s1624_s1 }
 0x17c   :  { %v184_v25 = vpop.permute.xlu0 %183 }
 0x17d   :  { %v1705_v26 = vadd.f32 %v184_v25, %v176_v24 }
 0x17f   :  { %1438 = vtanh.f32 %v1705_v26 }
 0x185   :  { %v1439_v27 = vpop.eup %1438 }
 0x186   :  { %189 = vrot.lane.b32.xlu1 %v1439_v27, %s1624_s1 }
 0x1f8   :  { %v190_v41 = vpop.permute.xlu1 %189 }
 0x1f9   :  { %v192_v42 = vmul.f32 %v190_v41, %v173_v22 }
 0x1fb   :  { %194 = vrot.lane.b32.xlu1 %v192_v42, %s1626_s2 }
 0x26d   :  { %v195_v44 = vpop.permute.xlu1 %194 }
 0x26e   :  { %1384 = vmatmul.msk.f32.vlgmr.msra.gmra.mxu1 %vm65_vm0, %v195_v44  ;;  %1385 = vmatmul.msk.f32.vlgmr.msra.gmra.mxu3 %vm65_vm0, %v195_v44 }
 0x26f   :  { %555 = vmatpush.msra.mxu3 %v1723_v31  ;;  %506 = vmatpush.msra.mxu1 %v1716_v30 }
 0x271   :  { %556 = vmatpush.msra.mxu3 %v1736_v34  ;;  %507 = vmatpush.msra.mxu1 %v1728_v32 }
 0x273   :  { %557 = vmatpush.msra.mxu3 %v1748_v36  ;;  %508 = vmatpush.msra.mxu1 %v1741_v35 }
 0x275   :  { %558 = vmatpush.msra.mxu3 %v1763_v39  ;;  %509 = vmatpush.msra.mxu1 %v1756_v38 }
 0x2eb   :  { %v215_v46 = vpop.f32.mrf.mxu1 }
 0x2ec   :  { %v218_v48 = vadd.f32 %v1803_v45, %v215_v46 }
 0x2ee   :  { %v242_v50 = vadd.f32 %v239_v47, %v218_v48 }
 0x2f0   :  { %1440 = vtanh.f32 %v242_v50  ;;  %v1386_v56 = vmul.f32 -1.442695, %v242_v50 }
 0x2f1   :  { %v262_v52 = vpop.f32.mrf.mxu3 }
 0x2f2   :  { %v265_v53 = vadd.f32 %v262_v52, %v111_v51 }
 0x2f4   :  { %1442 = vtanh.f32 %v265_v53  ;;  %v1387_v57 = vmul.f32 -1.442695, %v265_v53 }
 0x2f5   :  { %1444 = vpow2.f32 %v1386_v56 }
 0x2f6   :  { %v1441_v54 = vpop.eup %1440  ;;  %1446 = vpow2.f32 %v1387_v57 }
 0x2f7   :  { %288 = vrot.lane.b32.xlu2 %v1441_v54, %s1624_s1 }
 0x2fa   :  { %v1443_v55 = vpop.eup %1442 }
 0x2fb   :  { %v1445_v58 = vpop.eup %1444 }
 0x2fc   :  { %v269_v59 = vadd.f32 1.0, %v1445_v58  ;;  %v1447_v60 = vpop.eup %1446 }
 0x2fd   :  { %v306_v61 = vadd.f32 1.0, %v1447_v60 }
 0x2fe   :  { %1448 = vrcp.f32 %v269_v59  ;;  %v281_v7 = vand.u32 2147483648, %v269_v59  ;;  %vm275_vm6 = vweird.f32 %v269_v59  ;;  %v279_v8 = vand.u32 2147483647, %v269_v59 }
 0x2ff   :  { %325 = vrot.lane.b32.xlu2 %v1443_v55, %s1624_s1  ;;  %1450 = vrcp.f32 %v306_v61  ;;  %v318_v16 = vand.u32 2147483648, %v306_v61  ;;  %vm312_vm10 = vweird.f32 %v306_v61  ;;  %v316_v17 = vand.u32 2147483647, %v306_v61 }
 0x300   :  { %v282_v11 = vor.u32 1.1754944e-38, %v281_v7  ;;  %vm280_vm8 = vcmp.eq.f32.partialorder %v279_v8, 8.507059e+37 }
 0x301   :  { %v319_v19 = vor.u32 1.1754944e-38, %v318_v16  ;;  %vm317_vm12 = vcmp.eq.f32.partialorder %v316_v17, 8.507059e+37 }
 0x304   :  { %v1449_v62 = vpop.eup %1448 }
 0x305   :  { %v271_v63 = vmul.f32 %v1449_v62, %v269_v59  ;;  %v1451_v1 = vpop.eup %1450  ;;  %vm276_vm5 = vweird.f32 %v1449_v62 }
 0x306   :  { %v308_v3 = vmul.f32 %v1451_v1, %v306_v61  ;;  %vm277_vm7 = vmor %vm275_vm6, %vm276_vm5  ;;  %vm313_vm9 = vweird.f32 %v1451_v1 }
 0x307   :  { %v272_v0 = vsub.f32 1.0, %v271_v63  ;;  %vm314_vm11 = vmor %vm312_vm10, %vm313_vm9 }
 0x308   :  { %v309_v6 = vsub.f32 1.0, %v308_v3 }
 0x309   :  { %v273_v2 = vmul.f32 %v1449_v62, %v272_v0 }
 0x30a   :  { %v310_v10 = vmul.f32 %v1451_v1, %v309_v6 }
 0x30b   :  { %v274_v4 = vadd.f32 %v1449_v62, %v273_v2 }
 0x30c   :  { %v311_v15 = vadd.f32 %v1451_v1, %v310_v10 }
 0x30d   :  { %v278_v9 = vsel %vm277_vm7, %v1449_v62, %v274_v4 }
 0x30e   :  { %v283_v13 = vsel %vm280_vm8, %v282_v11, %v278_v9  ;;  %v315_v18 = vsel %vm314_vm11, %v1451_v1, %v311_v15 }
 0x30f   :  { %v320_v20 = vsel %vm317_vm12, %v319_v19, %v315_v18  ;;  %v286_v23 = vmul.f32 0.0, %v283_v13 }
 0x310   :  { %v323_v27 = vmul.f32 %v320_v20, %v1705_v26  ;;  %v51_v26 = vld [vmem:[%s2060_s0 + $0x10] sm:$0xff] }
 0x311   :  { %1377 = vmatmul.msk.f32.gmra.mxu0 %vm65_vm0, %v51_v26 }
 0x351   :  { %v289_v12 = vpop.permute.xlu2 %288 }
 0x352   :  { %v291_v14 = vmul.f32 %v289_v12, %v283_v13 }
 0x354   :  { %293 = vrot.lane.b32.xlu0 %v291_v14, %s1624_s1 }
 0x359   :  { %v326_v21 = vpop.permute.xlu2 %325 }
 0x35a   :  { %v328_v22 = vmul.f32 %v326_v21, %v320_v20 }
 0x35c   :  { %330 = vrot.lane.b32.xlu1 %v328_v22, %s1624_s1 }
 0x38e   :  { %v113_v52 = vpop.f32.mrf.mxu0 }
 0x38f   :  { %v114_v56 = vadd.f32 %v1700_v5, %v113_v52 }
 0x3c6   :  { %v294_v24 = vpop.permute.xlu0 %293 }
 0x3c7   :  { %v1811_v25 = vadd.f32 %v294_v24, %v286_v23 }
 0x3c9   :  { %1452 = vtanh.f32 %v1811_v25 }
 0x3ce   :  { %v331_v40 = vpop.permute.xlu1 %330 }
 0x3cf   :  { %v1453_v41 = vpop.eup %1452  ;;  %v1815_v42 = vadd.f32 %v331_v40, %v323_v27 }
 0x3d0   :  { %299 = vrot.lane.b32.xlu2 %v1453_v41, %s1624_s1 }
 0x3d1   :  { %1454 = vtanh.f32 %v1815_v42 }
 0x3d7   :  { %v1455_v43 = vpop.eup %1454 }
 0x3d8   :  { %336 = vrot.lane.b32.xlu0 %v1455_v43, %s1624_s1 }
 0x42a   :  { %v300_v44 = vpop.permute.xlu2 %299 }
 0x42b   :  { %v302_v46 = vmul.f32 %v300_v44, %v283_v13 }
 0x42d   :  { %367 = vrot.lane.b32.xlu1 %v302_v46, %s1626_s2 }
 0x44a   :  { %v337_v47 = vpop.permute.xlu0 %336 }
 0x44b   :  { %v339_v48 = vmul.f32 %v337_v47, %v320_v20 }
 0x44d   :  { %341 = vrot.lane.b32.xlu2 %v339_v48, %s1626_s2 }
 0x49f   :  { %v368_v49 = vpop.permute.xlu1 %367 }
 0x4a0   :  { %1389 = vmatmul.msk.f32.vlgmr.msrb.gmra.mxu2 %vm65_vm0, %v368_v49 }
 0x4a1   :  { %681 = vmatpush.msrb.mxu2 %v1709_v28 }
 0x4a3   :  { %682 = vmatpush.msrb.mxu2 %v1711_v29 }
 0x4a5   :  { %683 = vmatpush.msrb.mxu2 %v1730_v33 }
 0x4a7   :  { %v342_v50 = vpop.permute.xlu2 %341  ;;  %684 = vmatpush.msrb.mxu2 %v1750_v37 }
 0x4a8   :  { %1388 = vmatmul.msk.f32.vlgmr.msrb.gmra.mxu1 %vm65_vm0, %v342_v50  ;;  %1390 = vmatmul.msk.f32.vlgmr.msrb.gmra.mxu3 %vm65_vm0, %v342_v50 }
 0x4a9   :  { %655 = vmatpush.msrb.mxu1 %v1716_v30  ;;  %704 = vmatpush.msrb.mxu3 %v1723_v31 }
 0x4ab   :  { %656 = vmatpush.msrb.mxu1 %v1728_v32  ;;  %705 = vmatpush.msrb.mxu3 %v1736_v34 }
 0x4ad   :  { %657 = vmatpush.msrb.mxu1 %v1741_v35  ;;  %706 = vmatpush.msrb.mxu3 %v1748_v36 }
 0x4af   :  { %658 = vmatpush.msrb.mxu1 %v1756_v38  ;;  %707 = vmatpush.msrb.mxu3 %v1763_v39 }
 0x523   :  { %v388_v54 = vpop.f32.mrf.mxu2 }
 0x525   :  { %v362_v51 = vpop.f32.mrf.mxu1 }
 0x526   :  { %v365_v53 = vadd.f32 %v1803_v45, %v362_v51 }
 0x528   :  { %v391_v55 = vadd.f32 %v388_v54, %v365_v53 }
 0x52a   :  { %1456 = vtanh.f32 %v391_v55  ;;  %v1391_v61 = vmul.f32 -1.442695, %v391_v55 }
 0x52b   :  { %v411_v57 = vpop.f32.mrf.mxu3 }
 0x52c   :  { %v414_v58 = vadd.f32 %v411_v57, %v114_v56 }
 0x52e   :  { %1458 = vtanh.f32 %v414_v58  ;;  %v1392_v62 = vmul.f32 -1.442695, %v414_v58 }
 0x52f   :  { %1460 = vpow2.f32 %v1391_v61 }
 0x530   :  { %v1457_v59 = vpop.eup %1456  ;;  %1462 = vpow2.f32 %v1392_v62 }
 0x531   :  { %437 = vrot.lane.b32.xlu0 %v1457_v59, %s1624_s1 }
 0x534   :  { %v1459_v60 = vpop.eup %1458 }
 0x535   :  { %474 = vrot.lane.b32.xlu1 %v1459_v60, %s1624_s1  ;;  %v1461_v63 = vpop.eup %1460 }
 0x536   :  { %v418_v0 = vadd.f32 1.0, %v1461_v63  ;;  %v1463_v1 = vpop.eup %1462 }
 0x537   :  { %v455_v2 = vadd.f32 1.0, %v1463_v1 }
 0x538   :  { %1464 = vrcp.f32 %v418_v0  ;;  %v430_v13 = vand.u32 2147483648, %v418_v0  ;;  %vm424_vm14 = vweird.f32 %v418_v0  ;;  %v428_v14 = vand.u32 2147483647, %v418_v0 }
 0x539   :  { %1466 = vrcp.f32 %v455_v2  ;;  %v467_v18 = vand.u32 2147483648, %v455_v2  ;;  %vm461_vm3 = vweird.f32 %v455_v2  ;;  %v465_v19 = vand.u32 2147483647, %v455_v2 }
 0x53a   :  { %v431_v17 = vor.u32 1.1754944e-38, %v430_v13  ;;  %vm429_vm2 = vcmp.eq.f32.partialorder %v428_v14, 8.507059e+37 }
 0x53b   :  { %v468_v24 = vor.u32 1.1754944e-38, %v467_v18  ;;  %vm466_vm5 = vcmp.eq.f32.partialorder %v465_v19, 8.507059e+37 }
 0x53e   :  { %v1465_v3 = vpop.eup %1464 }
 0x53f   :  { %v420_v4 = vmul.f32 %v1465_v3, %v418_v0  ;;  %v1467_v6 = vpop.eup %1466  ;;  %vm425_vm13 = vweird.f32 %v1465_v3 }
 0x540   :  { %v457_v8 = vmul.f32 %v1467_v6, %v455_v2  ;;  %vm426_vm15 = vmor %vm424_vm14, %vm425_vm13  ;;  %vm462_vm1 = vweird.f32 %v1467_v6 }
 0x541   :  { %v421_v7 = vsub.f32 1.0, %v420_v4  ;;  %vm463_vm4 = vmor %vm461_vm3, %vm462_vm1 }
 0x542   :  { %v458_v10 = vsub.f32 1.0, %v457_v8 }
 0x543   :  { %v422_v9 = vmul.f32 %v1465_v3, %v421_v7 }
 0x544   :  { %v459_v12 = vmul.f32 %v1467_v6, %v458_v10 }
 0x545   :  { %v423_v11 = vadd.f32 %v1465_v3, %v422_v9 }
 0x546   :  { %v460_v16 = vadd.f32 %v1467_v6, %v459_v12 }
 0x547   :  { %v427_v15 = vsel %vm426_vm15, %v1465_v3, %v423_v11 }
 0x548   :  { %v432_v21 = vsel %vm429_vm2, %v431_v17, %v427_v15  ;;  %v464_v23 = vsel %vm463_vm4, %v1467_v6, %v460_v16 }
 0x549   :  { %v469_v40 = vsel %vm466_vm5, %v468_v24, %v464_v23  ;;  %v435_v43 = vmul.f32 %v432_v21, %v1811_v25 }
 0x54a   :  { %v472_v48 = vmul.f32 %v469_v40, %v1815_v42  ;;  %v52_v42 = vld [vmem:[%s2060_s0 + $0x18] sm:$0xff] }
 0x54b   :  { %1378 = vmatmul.msk.f32.gmra.mxu0 %vm65_vm0, %v52_v42 }
 0x5a3   :  { %v438_v20 = vpop.permute.xlu0 %437 }
 0x5a4   :  { %v440_v22 = vmul.f32 %v438_v20, %v432_v21 }
 0x5a6   :  { %442 = vrot.lane.b32.xlu2 %v440_v22, %s1624_s1 }
 0x5a7   :  { %v475_v27 = vpop.permute.xlu1 %474 }
 0x5a8   :  { %v477_v41 = vmul.f32 %v475_v27, %v469_v40 }
 0x5aa   :  { %479 = vrot.lane.b32.xlu0 %v477_v41, %s1624_s1 }
 0x5c8   :  { %v116_v57 = vpop.f32.mrf.mxu0 }
 0x5c9   :  { %v117_v61 = vadd.f32 %v1700_v5, %v116_v57 }
 0x600   :  { %v443_v44 = vpop.permute.xlu2 %442 }
 0x601   :  { %v1848_v46 = vadd.f32 %v443_v44, %v435_v43 }
 0x603   :  { %1468 = vtanh.f32 %v1848_v46 }
 0x609   :  { %v1469_v47 = vpop.eup %1468 }
 0x60a   :  { %448 = vrot.lane.b32.xlu1 %v1469_v47, %s1624_s1 }
 0x61c   :  { %v480_v26 = vpop.permute.xlu0 %479 }
 0x61d   :  { %v1853_v49 = vadd.f32 %v480_v26, %v472_v48 }
 0x61f   :  { %1470 = vtanh.f32 %v1853_v49 }
 0x625   :  { %v1471_v50 = vpop.eup %1470 }
 0x626   :  { %485 = vrot.lane.b32.xlu2 %v1471_v50, %s1624_s1 }
 0x67c   :  { %v449_v51 = vpop.permute.xlu1 %448 }
 0x67d   :  { %v451_v25 = vmul.f32 %v449_v51, %v432_v21 }
 0x67f   :  { %516 = vrot.lane.b32.xlu0 %v451_v25, %s1626_s2 }
 0x680   :  { %v486_v52 = vpop.permute.xlu2 %485 }
 0x681   :  { %v488_v53 = vmul.f32 %v486_v52, %v469_v40 }
 0x683   :  { %490 = vrot.lane.b32.xlu1 %v488_v53, %s1626_s2 }
 0x6f1   :  { %v517_v54 = vpop.permute.xlu0 %516 }
 0x6f2   :  { %1394 = vmatmul.msk.f32.vlgmr.msra.gmra.mxu2 %vm65_vm0, %v517_v54 }
 0x6f3   :  { %830 = vmatpush.msra.mxu2 %v1709_v28 }
 0x6f5   :  { %v491_v55 = vpop.permute.xlu1 %490  ;;  %831 = vmatpush.msra.mxu2 %v1711_v29 }
 0x6f6   :  { %1393 = vmatmul.msk.f32.vlgmr.msra.gmra.mxu1 %vm65_vm0, %v491_v55  ;;  %1395 = vmatmul.msk.f32.vlgmr.msra.gmra.mxu3 %vm65_vm0, %v491_v55 }
 0x6f7   :  { %853 = vmatpush.msra.mxu3 %v1723_v31  ;;  %804 = vmatpush.msra.mxu1 %v1716_v30 }
 0x6f8   :  { %832 = vmatpush.msra.mxu2 %v1730_v33 }
 0x6f9   :  { %854 = vmatpush.msra.mxu3 %v1736_v34  ;;  %805 = vmatpush.msra.mxu1 %v1728_v32 }
 0x6fa   :  { %833 = vmatpush.msra.mxu2 %v1750_v37 }
 0x6fb   :  { %855 = vmatpush.msra.mxu3 %v1748_v36  ;;  %806 = vmatpush.msra.mxu1 %v1741_v35 }
 0x6fd   :  { %856 = vmatpush.msra.mxu3 %v1763_v39  ;;  %807 = vmatpush.msra.mxu1 %v1756_v38 }
 0x773   :  { %v511_v56 = vpop.f32.mrf.mxu1 }
 0x774   :  { %v514_v58 = vadd.f32 %v1803_v45, %v511_v56 }
 0x775   :  { %v537_v59 = vpop.f32.mrf.mxu2 }
 0x776   :  { %v540_v60 = vadd.f32 %v537_v59, %v514_v58 }
 0x778   :  { %1472 = vtanh.f32 %v540_v60  ;;  %v1396_v2 = vmul.f32 -1.442695, %v540_v60 }
 0x779   :  { %v560_v62 = vpop.f32.mrf.mxu3 }
 0x77a   :  { %v563_v63 = vadd.f32 %v560_v62, %v117_v61 }
 0x77c   :  { %1474 = vtanh.f32 %v563_v63  ;;  %v1397_v8 = vmul.f32 -1.442695, %v563_v63 }
 0x77d   :  { %1476 = vpow2.f32 %v1396_v2 }
 0x77e   :  { %v1473_v0 = vpop.eup %1472 }
 0x77f   :  { %586 = vrot.lane.b32.xlu2 %v1473_v0, %s1624_s1 }
 0x782   :  { %v1475_v1 = vpop.eup %1474 }
 0x783   :  { %623 = vrot.lane.b32.xlu0 %v1475_v1, %s1624_s1  ;;  %v1477_v3 = vpop.eup %1476 }
 0x784   :  { %v567_v4 = vadd.f32 1.0, %v1477_v3 }
 0x786   :  { %1478 = vrcp.f32 %v567_v4  ;;  %v579_v13 = vand.u32 2147483648, %v567_v4  ;;  %vm573_vm7 = vweird.f32 %v567_v4  ;;  %v577_v14 = vand.u32 2147483647, %v567_v4 }
 0x787   :  { %1480 = vpow2.f32 %v1397_v8 }
 0x788   :  { %v580_v17 = vor.u32 1.1754944e-38, %v579_v13  ;;  %vm578_vm9 = vcmp.eq.f32.partialorder %v577_v14, 8.507059e+37 }
 0x78c   :  { %v1479_v6 = vpop.eup %1478 }
 0x78d   :  { %v569_v7 = vmul.f32 %v1479_v6, %v567_v4  ;;  %v1481_v11 = vpop.eup %1480  ;;  %vm574_vm6 = vweird.f32 %v1479_v6 }
 0x78e   :  { %v604_v15 = vadd.f32 1.0, %v1481_v11  ;;  %vm575_vm8 = vmor %vm573_vm7, %vm574_vm6 }
 0x78f   :  { %v570_v9 = vsub.f32 1.0, %v569_v7 }
 0x790   :  { %1482 = vrcp.f32 %v604_v15  ;;  %v616_v40 = vand.u32 2147483648, %v604_v15  ;;  %vm610_vm11 = vweird.f32 %v604_v15  ;;  %v614_v41 = vand.u32 2147483647, %v604_v15 }
 0x791   :  { %v571_v10 = vmul.f32 %v1479_v6, %v570_v9 }
 0x792   :  { %v617_v44 = vor.u32 1.1754944e-38, %v616_v40  ;;  %vm615_vm13 = vcmp.eq.f32.partialorder %v614_v41, 8.507059e+37 }
 0x793   :  { %v572_v12 = vadd.f32 %v1479_v6, %v571_v10 }
 0x795   :  { %v576_v16 = vsel %vm575_vm8, %v1479_v6, %v572_v12 }
 0x796   :  { %v581_v19 = vsel %vm578_vm9, %v580_v17, %v576_v16  ;;  %v1483_v21 = vpop.eup %1482 }
 0x797   :  { %v606_v22 = vmul.f32 %v1483_v21, %v604_v15  ;;  %vm611_vm10 = vweird.f32 %v1483_v21  ;;  %v584_v50 = vmul.f32 %v581_v19, %v1848_v46 }
 0x798   :  { %vm612_vm12 = vmor %vm610_vm11, %vm611_vm10 }
 0x799   :  { %v607_v23 = vsub.f32 1.0, %v606_v22 }
 0x79b   :  { %v608_v24 = vmul.f32 %v1483_v21, %v607_v23 }
 0x79d   :  { %v609_v27 = vadd.f32 %v1483_v21, %v608_v24 }
 0x79f   :  { %v613_v43 = vsel %vm612_vm12, %v1483_v21, %v609_v27 }
 0x7a0   :  { %v618_v48 = vsel %vm615_vm13, %v617_v44, %v613_v43 }
 0x7a1   :  { %v621_v52 = vmul.f32 %v618_v48, %v1853_v49  ;;  %v53_v49 = vld [vmem:[%s2060_s0 + $0x20] sm:$0xff] }
 0x7a2   :  { %1379 = vmatmul.msk.f32.gmra.mxu0 %vm65_vm0, %v53_v49 }
 0x7d9   :  { %v587_v18 = vpop.permute.xlu2 %586 }
 0x7da   :  { %v589_v20 = vmul.f32 %v587_v18, %v581_v19 }
 0x7dc   :  { %591 = vrot.lane.b32.xlu1 %v589_v20, %s1624_s1 }
 0x7f5   :  { %v624_v47 = vpop.permute.xlu0 %623 }
 0x7f6   :  { %v626_v26 = vmul.f32 %v624_v47, %v618_v48 }
 0x7f8   :  { %628 = vrot.lane.b32.xlu2 %v626_v26, %s1624_s1 }
 0x81f   :  { %v119_v62 = vpop.f32.mrf.mxu0 }
 0x820   :  { %v120_v2 = vadd.f32 %v1700_v5, %v119_v62 }
 0x84e   :  { %v592_v51 = vpop.permute.xlu1 %591 }
 0x84f   :  { %v1885_v25 = vadd.f32 %v592_v51, %v584_v50 }
 0x851   :  { %1484 = vtanh.f32 %v1885_v25 }
 0x852   :  { %v629_v53 = vpop.permute.xlu2 %628 }
 0x853   :  { %v1889_v42 = vadd.f32 %v629_v53, %v621_v52 }
 0x855   :  { %1486 = vtanh.f32 %v1889_v42 }
 0x857   :  { %v1485_v54 = vpop.eup %1484 }
 0x858   :  { %597 = vrot.lane.b32.xlu0 %v1485_v54, %s1624_s1 }
 0x85b   :  { %v1487_v55 = vpop.eup %1486 }
 0x85c   :  { %634 = vrot.lane.b32.xlu1 %v1487_v55, %s1624_s1 }
 0x8ca   :  { %v598_v56 = vpop.permute.xlu0 %597 }
 0x8cb   :  { %v600_v46 = vmul.f32 %v598_v56, %v581_v19 }
 0x8cd   :  { %665 = vrot.lane.b32.xlu2 %v600_v46, %s1626_s2 }
 0x8ce   :  { %v635_v57 = vpop.permute.xlu1 %634 }
 0x8cf   :  { %v637_v58 = vmul.f32 %v635_v57, %v618_v48 }
 0x8d1   :  { %639 = vrot.lane.b32.xlu0 %v637_v58, %s1626_s2 }
 0x927   :  { %v666_v59 = vpop.permute.xlu2 %665 }
 0x928   :  { %1399 = vmatmul.msk.f32.vlgmr.msrb.gmra.mxu2 %vm65_vm0, %v666_v59 }
 0x929   :  { %979 = vmatpush.msrb.mxu2 %v1709_v28 }
 0x92b   :  { %980 = vmatpush.msrb.mxu2 %v1711_v29 }
 0x92d   :  { %981 = vmatpush.msrb.mxu2 %v1730_v33 }
 0x92f   :  { %982 = vmatpush.msrb.mxu2 %v1750_v37 }
 0x943   :  { %v640_v60 = vpop.permute.xlu0 %639 }
 0x944   :  { %1398 = vmatmul.msk.f32.vlgmr.msrb.gmra.mxu1 %vm65_vm0, %v640_v60  ;;  %1400 = vmatmul.msk.f32.vlgmr.msrb.gmra.mxu3 %vm65_vm0, %v640_v60 }
 0x945   :  { %1002 = vmatpush.msrb.mxu3 %v1723_v31  ;;  %953 = vmatpush.msrb.mxu1 %v1716_v30 }
 0x947   :  { %1003 = vmatpush.msrb.mxu3 %v1736_v34  ;;  %954 = vmatpush.msrb.mxu1 %v1728_v32 }
 0x949   :  { %1004 = vmatpush.msrb.mxu3 %v1748_v36  ;;  %955 = vmatpush.msrb.mxu1 %v1741_v35 }
 0x94b   :  { %1005 = vmatpush.msrb.mxu3 %v1763_v39  ;;  %956 = vmatpush.msrb.mxu1 %v1756_v38 }
 0x9ab   :  { %v686_v0 = vpop.f32.mrf.mxu2 }
 0x9c1   :  { %v660_v61 = vpop.f32.mrf.mxu1 }
 0x9c2   :  { %v663_v63 = vadd.f32 %v1803_v45, %v660_v61 }
 0x9c4   :  { %v689_v1 = vadd.f32 %v686_v0, %v663_v63 }
 0x9c6   :  { %1488 = vtanh.f32 %v689_v1  ;;  %v1401_v11 = vmul.f32 -1.442695, %v689_v1 }
 0x9c7   :  { %v709_v3 = vpop.f32.mrf.mxu3 }
 0x9c8   :  { %v712_v4 = vadd.f32 %v709_v3, %v120_v2 }
 0x9ca   :  { %1490 = vtanh.f32 %v712_v4  ;;  %v1402_v8 = vmul.f32 -1.442695, %v712_v4 }
 0x9cc   :  { %v1489_v6 = vpop.eup %1488  ;;  %1492 = vpow2.f32 %v1402_v8 }
 0x9cd   :  { %735 = vrot.lane.b32.xlu1 %v1489_v6, %s1624_s1 }
 0x9d0   :  { %v1491_v7 = vpop.eup %1490 }
 0x9d1   :  { %772 = vrot.lane.b32.xlu2 %v1491_v7, %s1624_s1 }
 0x9d2   :  { %v1493_v9 = vpop.eup %1492 }
 0x9d3   :  { %v753_v10 = vadd.f32 1.0, %v1493_v9 }
 0x9d5   :  { %1494 = vrcp.f32 %v753_v10  ;;  %v765_v19 = vand.u32 2147483648, %v753_v10  ;;  %vm759_vm15 = vweird.f32 %v753_v10  ;;  %v763_v20 = vand.u32 2147483647, %v753_v10 }
 0x9d6   :  { %1496 = vpow2.f32 %v1401_v11 }
 0x9d7   :  { %v766_v23 = vor.u32 1.1754944e-38, %v765_v19  ;;  %vm764_vm2 = vcmp.eq.f32.partialorder %v763_v20, 8.507059e+37 }
 0x9db   :  { %v1495_v12 = vpop.eup %1494 }
 0x9dc   :  { %v755_v13 = vmul.f32 %v1495_v12, %v753_v10  ;;  %v1497_v14 = vpop.eup %1496  ;;  %vm760_vm14 = vweird.f32 %v1495_v12 }
 0x9dd   :  { %v716_v16 = vadd.f32 1.0, %v1497_v14  ;;  %vm761_vm1 = vmor %vm759_vm15, %vm760_vm14 }
 0x9de   :  { %v756_v15 = vsub.f32 1.0, %v755_v13 }
 0x9df   :  { %1498 = vrcp.f32 %v716_v16  ;;  %v728_v48 = vand.u32 2147483648, %v716_v16  ;;  %vm722_vm4 = vweird.f32 %v716_v16  ;;  %v726_v26 = vand.u32 2147483647, %v716_v16 }
 0x9e0   :  { %v757_v17 = vmul.f32 %v1495_v12, %v756_v15 }
 0x9e1   :  { %v729_v51 = vor.u32 1.1754944e-38, %v728_v48  ;;  %vm727_vm6 = vcmp.eq.f32.partialorder %v726_v26, 8.507059e+37 }
 0x9e2   :  { %v758_v18 = vadd.f32 %v1495_v12, %v757_v17 }
 0x9e4   :  { %v762_v21 = vsel %vm761_vm1, %v1495_v12, %v758_v18 }
 0x9e5   :  { %v1499_v22 = vpop.eup %1498  ;;  %v767_v27 = vsel %vm764_vm2, %v766_v23, %v762_v21 }
 0x9e6   :  { %v718_v41 = vmul.f32 %v1499_v22, %v716_v16  ;;  %vm723_vm3 = vweird.f32 %v1499_v22  ;;  %v770_v55 = vmul.f32 %v767_v27, %v1889_v42 }
 0x9e7   :  { %vm724_vm5 = vmor %vm722_vm4, %vm723_vm3 }
 0x9e8   :  { %v719_v43 = vsub.f32 1.0, %v718_v41 }
 0x9ea   :  { %v720_v44 = vmul.f32 %v1499_v22, %v719_v43 }
 0x9ec   :  { %v721_v47 = vadd.f32 %v1499_v22, %v720_v44 }
 0x9ee   :  { %v725_v50 = vsel %vm724_vm5, %v1499_v22, %v721_v47 }
 0x9ef   :  { %v730_v53 = vsel %vm727_vm6, %v729_v51, %v725_v50 }
 0x9f0   :  { %v733_v58 = vmul.f32 %v730_v53, %v1885_v25  ;;  %v54_v25 = vld [vmem:[%s2060_s0 + $0x28] sm:$0xff] }
 0x9f1   :  { %1380 = vmatmul.msk.f32.gmra.mxu0 %vm65_vm0, %v54_v25  ;;  %v1564_v25 = vld [vmem:[#allocation3 + $0x10] sm:$0xff] }
 0xa2b   :  { %v773_v24 = vpop.permute.xlu2 %772 }
 0xa2c   :  { %v775_v40 = vmul.f32 %v773_v24, %v767_v27 }
 0xa2e   :  { %777 = vrot.lane.b32.xlu1 %v775_v40, %s1624_s1 }
 0xa3f   :  { %v736_v52 = vpop.permute.xlu1 %735 }
 0xa40   :  { %v738_v54 = vmul.f32 %v736_v52, %v730_v53 }
 0xa42   :  { %740 = vrot.lane.b32.xlu0 %v738_v54, %s1624_s1 }
 0xaa0   :  { %v778_v56 = vpop.permute.xlu1 %777 }
 0xaa1   :  { %v1922_v46 = vadd.f32 %v778_v56, %v770_v55 }
 0xaa3   :  { %1500 = vtanh.f32 %v1922_v46 }
 0xaa9   :  { %v1501_v57 = vpop.eup %1500 }
 0xaaa   :  { %783 = vrot.lane.b32.xlu0 %v1501_v57, %s1624_s1 }
 0xab4   :  { %v741_v49 = vpop.permute.xlu0 %740 }
 0xab5   :  { %v1927_v59 = vadd.f32 %v741_v49, %v733_v58 }
 0xab7   :  { %1502 = vtanh.f32 %v1927_v59 }
 0xabd   :  { %v1503_v60 = vpop.eup %1502 }
 0xabe   :  { %746 = vrot.lane.b32.xlu2 %v1503_v60, %s1624_s1  ;;  %v1560_v60 = vld [vmem:[%s2064_s4 + $0x18] sm:$0xff] }
 0xb18   :  { %v747_v61 = vpop.permute.xlu2 %746 }
 0xb19   :  { %v749_v42 = vmul.f32 %v747_v61, %v730_v53  ;;  %v1561_v61 = vld [vmem:[%s2064_s4 + $0x10] sm:$0xff] }
 0xb1b   :  { %814 = vrot.lane.b32.xlu1 %v749_v42, %s1626_s2  ;;  %v1562_v42 = vld [vmem:[%s2064_s4 + $0x8] sm:$0xff] }
 0xb1c   :  { %v784_v62 = vpop.permute.xlu0 %783 }
 0xb1d   :  { %v786_v63 = vmul.f32 %v784_v62, %v767_v27 }
 0xb1f   :  { %788 = vrot.lane.b32.xlu2 %v786_v63, %s1626_s2  ;;  %v1563_v63 = vld [vmem:[#allocation3 + $0x18] sm:$0xff] }
 0xb79   :  { %v789_v0 = vpop.permute.xlu2 %788 }
 0xb7a   :  { %1403 = vmatmul.msk.f32.vlgmr.msra.gmra.mxu1 %vm65_vm0, %v789_v0  ;;  %1405 = vmatmul.msk.f32.vlgmr.msra.gmra.mxu3 %vm65_vm0, %v789_v0  ;;  %v1565_v0 = vld [vmem:[#allocation3 + $0x8] sm:$0xff] }
 0xb7b   :  { %1102 = vmatpush.msra.mxu1 %v1716_v30  ;;  %1151 = vmatpush.msra.mxu3 %v1723_v31  ;;  %v122_v30 = vpop.f32.mrf.mxu0 }
 0xb7c   :  { %v123_v31 = vadd.f32 %v1700_v5, %v122_v30 }
 0xb7d   :  { %1103 = vmatpush.msra.mxu1 %v1728_v32  ;;  %1152 = vmatpush.msra.mxu3 %v1736_v34 }
 0xb7f   :  { %1104 = vmatpush.msra.mxu1 %v1741_v35  ;;  %1153 = vmatpush.msra.mxu3 %v1748_v36 }
 0xb81   :  { %1105 = vmatpush.msra.mxu1 %v1756_v38  ;;  %1154 = vmatpush.msra.mxu3 %v1763_v39 }
 0xb8d   :  { %v815_v1 = vpop.permute.xlu1 %814 }
 0xb8e   :  { %1404 = vmatmul.msk.f32.vlgmr.msra.gmra.mxu2 %vm65_vm0, %v815_v1  ;;  %v1566_v1 = vld [vmem:[#allocation3] sm:$0xff] }
 0xb8f   :  { %1128 = vmatpush.msra.mxu2 %v1709_v28 }
 0xb91   :  { %1129 = vmatpush.msra.mxu2 %v1711_v29 }
 0xb93   :  { %1130 = vmatpush.msra.mxu2 %v1730_v33 }
 0xb95   :  { %1131 = vmatpush.msra.mxu2 %v1750_v37 }
 0xbf7   :  { %v809_v36 = vpop.f32.mrf.mxu1 }
 0xbf8   :  { %v812_v39 = vadd.f32 %v1803_v45, %v809_v36 }
 0xbfd   :  { %v858_v32 = vpop.f32.mrf.mxu3 }
 0xbfe   :  { %v861_v34 = vadd.f32 %v858_v32, %v123_v31  ;;  %v1990_v31 = vld [vmem:[%s2063_s3] ss:$0 sm:$0xff] }
 0xc00   :  { %1504 = vtanh.f32 %v861_v34  ;;  %v1407_v33 = vmul.f32 -1.442695, %v861_v34 }
 0xc06   :  { %v1505_v35 = vpop.eup %1504 }
 0xc07   :  { %921 = vrot.lane.b32.xlu1 %v1505_v35, %s1624_s1 }
 0xc11   :  { %v835_v2 = vpop.f32.mrf.mxu2 }
 0xc12   :  { %v838_v28 = vadd.f32 %v835_v2, %v812_v39 }
 0xc14   :  { %1506 = vtanh.f32 %v838_v28  ;;  %v1406_v5 = vmul.f32 -1.442695, %v838_v28 }
 0xc15   :  { %1508 = vpow2.f32 %v1407_v33 }
 0xc1a   :  { %v1507_v29 = vpop.eup %1506 }
 0xc1b   :  { %884 = vrot.lane.b32.xlu0 %v1507_v29, %s1624_s1  ;;  %v1509_v37 = vpop.eup %1508 }
 0xc1c   :  { %v902_v3 = vadd.f32 1.0, %v1509_v37 }
 0xc1e   :  { %1510 = vrcp.f32 %v902_v3  ;;  %v914_v12 = vand.u32 2147483648, %v902_v3  ;;  %vm908_vm8 = vweird.f32 %v902_v3  ;;  %v912_v13 = vand.u32 2147483647, %v902_v3 }
 0xc1f   :  { %1512 = vpow2.f32 %v1406_v5 }
 0xc20   :  { %v915_v16 = vor.u32 1.1754944e-38, %v914_v12  ;;  %vm913_vm10 = vcmp.eq.f32.partialorder %v912_v13, 8.507059e+37 }
 0xc24   :  { %v1511_v4 = vpop.eup %1510 }
 0xc25   :  { %v904_v6 = vmul.f32 %v1511_v4, %v902_v3  ;;  %v1513_v7 = vpop.eup %1512  ;;  %vm909_vm7 = vweird.f32 %v1511_v4 }
 0xc26   :  { %v865_v9 = vadd.f32 1.0, %v1513_v7  ;;  %vm910_vm9 = vmor %vm908_vm8, %vm909_vm7 }
 0xc27   :  { %v905_v8 = vsub.f32 1.0, %v904_v6 }
 0xc28   :  { %1514 = vrcp.f32 %v865_v9  ;;  %v877_v24 = vand.u32 2147483648, %v865_v9  ;;  %vm871_vm12 = vweird.f32 %v865_v9  ;;  %v875_v27 = vand.u32 2147483647, %v865_v9 }
 0xc29   :  { %v906_v10 = vmul.f32 %v1511_v4, %v905_v8 }
 0xc2a   :  { %v878_v41 = vor.u32 1.1754944e-38, %v877_v24  ;;  %vm876_vm14 = vcmp.eq.f32.partialorder %v875_v27, 8.507059e+37 }
 0xc2b   :  { %v907_v11 = vadd.f32 %v1511_v4, %v906_v10 }
 0xc2d   :  { %v911_v14 = vsel %vm910_vm9, %v1511_v4, %v907_v11 }
 0xc2e   :  { %v1515_v15 = vpop.eup %1514  ;;  %v916_v18 = vsel %vm913_vm10, %v915_v16, %v911_v14 }
 0xc2f   :  { %v867_v20 = vmul.f32 %v1515_v15, %v865_v9  ;;  %vm872_vm11 = vweird.f32 %v1515_v15  ;;  %v919_v51 = vmul.f32 %v916_v18, %v1922_v46  ;;  %v55_v46 = vld [vmem:[%s2060_s0 + $0x30] sm:$0xff] }
 0xc30   :  { %vm873_vm13 = vmor %vm871_vm12, %vm872_vm11  ;;  %1381 = vmatmul.msk.f32.gmra.mxu0 %vm65_vm0, %v55_v46 }
 0xc31   :  { %v868_v21 = vsub.f32 1.0, %v867_v20 }
 0xc33   :  { %v869_v22 = vmul.f32 %v1515_v15, %v868_v21 }
 0xc35   :  { %v870_v23 = vadd.f32 %v1515_v15, %v869_v22 }
 0xc37   :  { %v874_v40 = vsel %vm873_vm13, %v1515_v15, %v870_v23 }
 0xc38   :  { %v879_v44 = vsel %vm876_vm14, %v878_v41, %v874_v40 }
 0xc39   :  { %v882_v48 = vmul.f32 %v879_v44, %v1927_v59 }
 0xc79   :  { %v922_v17 = vpop.permute.xlu1 %921 }
 0xc7a   :  { %v924_v19 = vmul.f32 %v922_v17, %v916_v18 }
 0xc7c   :  { %926 = vrot.lane.b32.xlu0 %v924_v19, %s1624_s1 }
 0xc8d   :  { %v885_v43 = vpop.permute.xlu0 %884 }
 0xc8e   :  { %v887_v47 = vmul.f32 %v885_v43, %v879_v44 }
 0xc90   :  { %889 = vrot.lane.b32.xlu2 %v887_v47, %s1624_s1 }
 0xcad   :  { %v125_v30 = vpop.f32.mrf.mxu0 }
 0xcae   :  { %v126_v32 = vadd.f32 %v1990_v31, %v125_v30 }
 0xcea   :  { %v890_v26 = vpop.permute.xlu2 %889 }
 0xceb   :  { %v1959_v50 = vadd.f32 %v890_v26, %v882_v48 }
 0xced   :  { %1516 = vtanh.f32 %v1959_v50 }
 0xcee   :  { %v927_v52 = vpop.permute.xlu0 %926 }
 0xcef   :  { %v1963_v53 = vadd.f32 %v927_v52, %v919_v51 }
 0xcf1   :  { %1518 = vtanh.f32 %v1963_v53 }
 0xcf3   :  { %v1517_v54 = vpop.eup %1516 }
 0xcf4   :  { %895 = vrot.lane.b32.xlu1 %v1517_v54, %s1624_s1 }
 0xcf7   :  { %v1519_v55 = vpop.eup %1518 }
 0xcf8   :  { %932 = vrot.lane.b32.xlu2 %v1519_v55, %s1624_s1 }
 0xd52   :  { %v933_v56 = vpop.permute.xlu2 %932 }
 0xd53   :  { %v935_v57 = vmul.f32 %v933_v56, %v916_v18 }
 0xd55   :  { %937 = vrot.lane.b32.xlu1 %v935_v57, %s1626_s2 }
 0xd66   :  { %v896_v58 = vpop.permute.xlu1 %895 }
 0xd67   :  { %v898_v49 = vmul.f32 %v896_v58, %v879_v44 }
 0xd69   :  { %963 = vrot.lane.b32.xlu0 %v898_v49, %s1626_s2 }
 0xdc7   :  { %v938_v59 = vpop.permute.xlu1 %937 }
 0xdc8   :  { %1408 = vmatmul.msk.f32.vlgmr.msrb.gmra.mxu1 %vm65_vm0, %v938_v59  ;;  %1410 = vmatmul.msk.f32.vlgmr.msrb.gmra.mxu3 %vm65_vm0, %v938_v59 }
 0xdc9   :  { %1251 = vmatpush.msrb.mxu1 %v1560_v60 }
 0xdcb   :  { %1252 = vmatpush.msrb.mxu1 %v1561_v61 }
 0xdcd   :  { %1253 = vmatpush.msrb.mxu1 %v1562_v42  ;;  %v2020_v42 = vld [vmem:[%s2066_s6] ss:$0 sm:$0xff] }
 0xdcf   :  { %1254 = vmatpush.msrb.mxu1 %v1756_v38 }
 0xddb   :  { %v964_v62 = vpop.permute.xlu0 %963 }
 0xddc   :  { %1409 = vmatmul.msk.f32.vlgmr.msrb.gmra.mxu2 %vm65_vm0, %v964_v62 }
 0xddd   :  { %1277 = vmatpush.msrb.mxu2 %v1563_v63 }
 0xddf   :  { %1278 = vmatpush.msrb.mxu2 %v1564_v25 }
 0xde1   :  { %1279 = vmatpush.msrb.mxu2 %v1565_v0 }
 0xde3   :  { %1280 = vmatpush.msrb.mxu2 %v1566_v1 }
 0xe45   :  { %v958_v36 = vpop.f32.mrf.mxu1 }
 0xe46   :  { %v961_v39 = vadd.f32 %v1803_v45, %v958_v36 }
 0xe4b   :  { %v1007_v38 = vpop.f32.mrf.mxu3 }
 0xe4c   :  { %v1010_v34 = vadd.f32 %v1007_v38, %v126_v32 }
 0xe4e   :  { %1520 = vtanh.f32 %v1010_v34  ;;  %v1412_v37 = vmul.f32 -1.442695, %v1010_v34 }
 0xe54   :  { %v1521_v35 = vpop.eup %1520 }
 0xe55   :  { %1070 = vrot.lane.b32.xlu0 %v1521_v35, %s1624_s1 }
 0xe5f   :  { %v984_v2 = vpop.f32.mrf.mxu2 }
 0xe60   :  { %v987_v28 = vadd.f32 %v984_v2, %v961_v39 }
 0xe62   :  { %1522 = vtanh.f32 %v987_v28  ;;  %v1411_v33 = vmul.f32 -1.442695, %v987_v28 }
 0xe64   :  { %1524 = vpow2.f32 %v1411_v33 }
 0xe65   :  { %1526 = vpow2.f32 %v1412_v37 }
 0xe68   :  { %v1523_v29 = vpop.eup %1522 }
 0xe69   :  { %1033 = vrot.lane.b32.xlu2 %v1523_v29, %s1624_s1 }
 0xe6a   :  { %v1525_v3 = vpop.eup %1524 }
 0xe6b   :  { %v1014_v5 = vadd.f32 1.0, %v1525_v3  ;;  %v1527_v4 = vpop.eup %1526 }
 0xe6c   :  { %v1051_v6 = vadd.f32 1.0, %v1527_v4 }
 0xe6d   :  { %1528 = vrcp.f32 %v1014_v5  ;;  %v1026_v15 = vand.u32 2147483648, %v1014_v5  ;;  %vm1020_vm1 = vweird.f32 %v1014_v5  ;;  %v1024_v16 = vand.u32 2147483647, %v1014_v5 }
 0xe6e   :  { %1530 = vrcp.f32 %v1051_v6  ;;  %v1063_v20 = vand.u32 2147483648, %v1051_v6  ;;  %vm1057_vm5 = vweird.f32 %v1051_v6  ;;  %v1061_v21 = vand.u32 2147483647, %v1051_v6 }
 0xe6f   :  { %v1027_v19 = vor.u32 1.1754944e-38, %v1026_v15  ;;  %vm1025_vm4 = vcmp.eq.f32.partialorder %v1024_v16, 8.507059e+37 }
 0xe70   :  { %v1064_v40 = vor.u32 1.1754944e-38, %v1063_v20  ;;  %vm1062_vm7 = vcmp.eq.f32.partialorder %v1061_v21, 8.507059e+37 }
 0xe73   :  { %v1529_v7 = vpop.eup %1528 }
 0xe74   :  { %v1016_v8 = vmul.f32 %v1529_v7, %v1014_v5  ;;  %v1531_v9 = vpop.eup %1530  ;;  %vm1021_vm15 = vweird.f32 %v1529_v7 }
 0xe75   :  { %v1053_v10 = vmul.f32 %v1531_v9, %v1051_v6  ;;  %vm1022_vm2 = vmor %vm1020_vm1, %vm1021_vm15  ;;  %vm1058_vm3 = vweird.f32 %v1531_v9 }
 0xe76   :  { %v1017_v45 = vsub.f32 1.0, %v1016_v8  ;;  %vm1059_vm6 = vmor %vm1057_vm5, %vm1058_vm3  ;;  %vm1356_vm5 = vcmask 80896  }
 0xe77   :  { %v1054_v12 = vsub.f32 1.0, %v1053_v10 }
 0xe78   :  { %v1018_v11 = vmul.f32 %v1529_v7, %v1017_v45 }
 0xe79   :  { %v1055_v14 = vmul.f32 %v1531_v9, %v1054_v12 }
 0xe7a   :  { %v1019_v13 = vadd.f32 %v1529_v7, %v1018_v11 }
 0xe7b   :  { %v1056_v18 = vadd.f32 %v1531_v9, %v1055_v14 }
 0xe7c   :  { %v1023_v17 = vsel %vm1022_vm2, %v1529_v7, %v1019_v13 }
 0xe7d   :  { %v1028_v23 = vsel %vm1025_vm4, %v1027_v19, %v1023_v17  ;;  %v1060_v27 = vsel %vm1059_vm6, %v1531_v9, %v1056_v18 }
 0xe7e   :  { %v1065_v43 = vsel %vm1062_vm7, %v1064_v40, %v1060_v27  ;;  %v1031_v52 = vmul.f32 %v1028_v23, %v1959_v50  ;;  %v56_v50 = vld [vmem:[%s2060_s0 + $0x38] sm:$0xff] }
 0xe7f   :  { %v1068_v47 = vmul.f32 %v1065_v43, %v1963_v53  ;;  %1382 = vmatmul.msk.f32.gmra.mxu0 %vm65_vm0, %v56_v50 }
 0xec3   :  { %v1034_v22 = vpop.permute.xlu2 %1033 }
 0xec4   :  { %v1036_v24 = vmul.f32 %v1034_v22, %v1028_v23 }
 0xec6   :  { %1038 = vrot.lane.b32.xlu1 %v1036_v24, %s1624_s1 }
 0xec7   :  { %v1071_v41 = vpop.permute.xlu0 %1070 }
 0xec8   :  { %v1073_v44 = vmul.f32 %v1071_v41, %v1065_v43 }
 0xeca   :  { %1075 = vrot.lane.b32.xlu2 %v1073_v44, %s1624_s1 }
 0xefc   :  { %v128_v61 = vpop.f32.mrf.mxu0 }
 0xefd   :  { %v129_v0 = vadd.f32 %v1990_v31, %v128_v61 }
 0xf24   :  { %v1076_v48 = vpop.permute.xlu2 %1075 }
 0xf25   :  { %v1999_v26 = vadd.f32 %v1076_v48, %v1068_v47 }
 0xf27   :  { %1532 = vtanh.f32 %v1999_v26 }
 0xf2d   :  { %v1533_v51 = vpop.eup %1532 }
 0xf2e   :  { %1081 = vrot.lane.b32.xlu1 %v1533_v51, %s1624_s1 }
 0xf38   :  { %v1039_v54 = vpop.permute.xlu1 %1038 }
 0xf39   :  { %v2004_v55 = vadd.f32 %v1039_v54, %v1031_v52 }
 0xf3b   :  { %1534 = vtanh.f32 %v2004_v55 }
 0xf41   :  { %v1535_v56 = vpop.eup %1534 }
 0xf42   :  { %1044 = vrot.lane.b32.xlu0 %v1535_v56, %s1624_s1 }
 0xfa0   :  { %v1082_v57 = vpop.permute.xlu1 %1081 }
 0xfa1   :  { %v1084_v53 = vmul.f32 %v1082_v57, %v1065_v43 }
 0xfa3   :  { %1086 = vrot.lane.b32.xlu0 %v1084_v53, %s1626_s2 }
 0xfb4   :  { %v1045_v58 = vpop.permute.xlu0 %1044 }
 0xfb5   :  { %v1047_v49 = vmul.f32 %v1045_v58, %v1028_v23 }
 0xfb7   :  { %1112 = vrot.lane.b32.xlu2 %v1047_v49, %s1626_s2 }
0x1011   :  { %v1113_v46 = vpop.permute.xlu2 %1112 }
0x1012   :  { %1414 = vmatmul.msk.f32.vlgmr.msra.gmra.mxu2 %vm65_vm0, %v1113_v46 }
0x1015   :  { %v1087_v59 = vpop.permute.xlu0 %1086 }
0x1016   :  { %1413 = vmatmul.msk.f32.vlgmr.msra.gmra.mxu1 %vm65_vm0, %v1087_v59  ;;  %1415 = vmatmul.msk.f32.vlgmr.msra.gmra.mxu3 %vm65_vm0, %v1087_v59 }
0x1093   :  { %v1107_v60 = vpop.f32.mrf.mxu1 }
0x1094   :  { %v1110_v62 = vadd.f32 %v2020_v42, %v1107_v60 }
0x1095   :  { %v1133_v63 = vpop.f32.mrf.mxu2 }
0x1096   :  { %v1136_v25 = vadd.f32 %v1133_v63, %v1110_v62 }
0x1098   :  { %1536 = vtanh.f32 %v1136_v25  ;;  %v1416_v39 = vmul.f32 -1.442695, %v1136_v25 }
0x1099   :  { %v1156_v1 = vpop.f32.mrf.mxu3 }
0x109a   :  { %v1159_v30 = vadd.f32 %v1156_v1, %v129_v0 }
0x109c   :  { %1538 = vtanh.f32 %v1159_v30  ;;  %v1417_v34 = vmul.f32 -1.442695, %v1159_v30 }
0x109e   :  { %v1537_v32 = vpop.eup %1536  ;;  %1540 = vpow2.f32 %v1417_v34 }
0x109f   :  { %1182 = vrot.lane.b32.xlu1 %v1537_v32, %s1624_s1 }
0x10a2   :  { %v1539_v38 = vpop.eup %1538 }
0x10a3   :  { %1219 = vrot.lane.b32.xlu2 %v1539_v38, %s1624_s1 }
0x10a4   :  { %v1541_v35 = vpop.eup %1540 }
0x10a5   :  { %v1200_v36 = vadd.f32 1.0, %v1541_v35 }
0x10a7   :  { %1542 = vrcp.f32 %v1200_v36  ;;  %v1212_v5 = vand.u32 2147483648, %v1200_v36  ;;  %vm1206_vm9 = vweird.f32 %v1200_v36  ;;  %v1210_v4 = vand.u32 2147483647, %v1200_v36 }
0x10a8   :  { %1544 = vpow2.f32 %v1416_v39 }
0x10a9   :  { %v1213_v8 = vor.u32 1.1754944e-38, %v1212_v5  ;;  %vm1211_vm11 = vcmp.eq.f32.partialorder %v1210_v4, 8.507059e+37  ;;  %v1431_v5 = vld [vmem:[%s2068_s8] ss:$0 sm:$0xff] }
0x10ad   :  { %v1543_v2 = vpop.eup %1542 }
0x10ae   :  { %v1202_v28 = vmul.f32 %v1543_v2, %v1200_v36  ;;  %v1545_v31 = vpop.eup %1544  ;;  %vm1207_vm8 = vweird.f32 %v1543_v2 }
0x10af   :  { %v1163_v33 = vadd.f32 1.0, %v1545_v31  ;;  %vm1208_vm10 = vmor %vm1206_vm9, %vm1207_vm8  ;;  %v1324_v31 = vld [vmem:[%s2067_s7 + $0x8] sm:$0xff] }
0x10b0   :  { %v1203_v29 = vsub.f32 1.0, %v1202_v28  ;;  %v1325_v28 = vld [vmem:[%s2067_s7 + $0x10] sm:$0xff] }
0x10b1   :  { %1546 = vrcp.f32 %v1163_v33  ;;  %v1175_v15 = vand.u32 2147483648, %v1163_v33  ;;  %vm1169_vm13 = vweird.f32 %v1163_v33  ;;  %v1173_v16 = vand.u32 2147483647, %v1163_v33 }
0x10b2   :  { %v1204_v37 = vmul.f32 %v1543_v2, %v1203_v29  ;;  %v1323_v29 = vld [vmem:[%s2067_s7] sm:$0xff] }
0x10b3   :  { %v1176_v18 = vor.u32 1.1754944e-38, %v1175_v15  ;;  %vm1174_vm15 = vcmp.eq.f32.partialorder %v1173_v16, 8.507059e+37 }
0x10b4   :  { %v1205_v3 = vadd.f32 %v1543_v2, %v1204_v37 }
0x10b6   :  { %v1209_v6 = vsel %vm1208_vm10, %v1543_v2, %v1205_v3  ;;  %v1326_v2 = vld [vmem:[%s2067_s7 + $0x18] sm:$0xff] }
0x10b7   :  { %v1547_v7 = vpop.eup %1546  ;;  %v1214_v45 = vsel %vm1211_vm11, %v1213_v8, %v1209_v6  ;;  %1348 = vmatpush.msrb.mxu3 %v1326_v2 }
0x10b8   :  { %v1165_v11 = vmul.f32 %v1547_v7, %v1163_v33  ;;  %vm1170_vm12 = vweird.f32 %v1547_v7  ;;  %v1217_v22 = vmul.f32 %v1214_v45, %v1999_v26 }
0x10b9   :  { %vm1171_vm14 = vmor %vm1169_vm13, %vm1170_vm12  ;;  %1349 = vmatpush.msrb.mxu3 %v1325_v28 }
0x10ba   :  { %v1166_v12 = vsub.f32 1.0, %v1165_v11 }
0x10bb   :  { %1350 = vmatpush.msrb.mxu3 %v1324_v31 }
0x10bc   :  { %v1167_v13 = vmul.f32 %v1547_v7, %v1166_v12 }
0x10bd   :  { %1351 = vmatpush.msrb.mxu3 %v1323_v29 }
0x10be   :  { %v1168_v14 = vadd.f32 %v1547_v7, %v1167_v13 }
0x10c0   :  { %v1172_v17 = vsel %vm1171_vm14, %v1547_v7, %v1168_v14 }
0x10c1   :  { %v1177_v20 = vsel %vm1174_vm15, %v1176_v18, %v1172_v17 }
0x10c2   :  { %v1180_v40 = vmul.f32 %v1177_v20, %v2004_v55 }
0x10fd   :  { %v1220_v9 = vpop.permute.xlu2 %1219 }
0x10fe   :  { %v1222_v10 = vmul.f32 %v1220_v9, %v1214_v45 }
0x1100   :  { %1224 = vrot.lane.b32.xlu1 %v1222_v10, %s1624_s1 }
0x1111   :  { %v1183_v19 = vpop.permute.xlu1 %1182 }
0x1112   :  { %v1185_v21 = vmul.f32 %v1183_v19, %v1177_v20 }
0x1114   :  { %1187 = vrot.lane.b32.xlu0 %v1185_v21, %s1624_s1 }
0x1172   :  { %v1225_v23 = vpop.permute.xlu1 %1224 }
0x1173   :  { %v1227_v24 = vadd.f32 %v1225_v23, %v1217_v22 }
0x1175   :  { %1548 = vtanh.f32 %v1227_v24 }
0x117b   :  { %v1549_v27 = vpop.eup %1548 }
0x117c   :  { %1230 = vrot.lane.b32.xlu0 %v1549_v27, %s1624_s1 }
0x1186   :  { %v1188_v41 = vpop.permute.xlu0 %1187 }
0x1187   :  { %v1190_v43 = vadd.f32 %v1188_v41, %v1180_v40 }
0x1189   :  { %1550 = vtanh.f32 %v1190_v43 }
0x118f   :  { %v1551_v44 = vpop.eup %1550 }
0x1190   :  { %1193 = vrot.lane.b32.xlu2 %v1551_v44, %s1624_s1 }
0x11ea   :  { %v1194_v47 = vpop.permute.xlu2 %1193 }
0x11eb   :  { %v1196_v48 = vmul.f32 %v1194_v47, %v1177_v20 }
0x11ed   :  { %1261 = vrot.lane.b32.xlu1 %v1196_v48, %s1626_s2 }
0x11ee   :  { %v1231_v51 = vpop.permute.xlu0 %1230 }
0x11ef   :  { %v1233_v26 = vmul.f32 %v1231_v51, %v1214_v45 }
0x11f1   :  { %1235 = vrot.lane.b32.xlu2 %v1233_v26, %s1626_s2 }
0x124b   :  { %v1236_v52 = vpop.permute.xlu2 %1235 }
0x124c   :  { %1418 = vmatmul.msk.f32.vlgmr.msrb.gmra.mxu1 %vm65_vm0, %v1236_v52 }
0x125f   :  { %v1262_v54 = vpop.permute.xlu1 %1261 }
0x1260   :  { %1419 = vmatmul.msk.f32.vlgmr.msrb.gmra.mxu2 %vm65_vm0, %v1262_v54 }
0x12c9   :  { %v1256_v55 = vpop.f32.mrf.mxu1 }
0x12ca   :  { %v1259_v56 = vadd.f32 %v2020_v42, %v1256_v55 }
0x12e3   :  { %v1282_v57 = vpop.f32.mrf.mxu2 }
0x12e4   :  { %v1285_v53 = vadd.f32 %v1282_v57, %v1259_v56 }
0x12e6   :  { %1552 = vtanh.f32 %v1285_v53  ;;  %v1420_v49 = vmul.f32 -1.442695, %v1285_v53 }
0x12e8   :  { %1554 = vpow2.f32 %v1420_v49 }
0x12ec   :  { %v1553_v58 = vpop.eup %1552 }
0x12ed   :  { %1308 = vrot.lane.b32.xlu0 %v1553_v58, %s1624_s1 }
0x12ee   :  { %v1555_v50 = vpop.eup %1554 }
0x12ef   :  { %v1289_v46 = vadd.f32 1.0, %v1555_v50 }
0x12f1   :  { %1556 = vrcp.f32 %v1289_v46  ;;  %v1301_v25 = vand.u32 2147483648, %v1289_v46  ;;  %vm1295_vm2 = vweird.f32 %v1289_v46  ;;  %v1299_v42 = vand.u32 2147483647, %v1289_v46 }
0x12f3   :  { %v1302_v1 = vor.u32 1.1754944e-38, %v1301_v25  ;;  %vm1300_vm4 = vcmp.eq.f32.partialorder %v1299_v42, 8.507059e+37 }
0x12f7   :  { %v1557_v59 = vpop.eup %1556 }
0x12f8   :  { %v1291_v60 = vmul.f32 %v1557_v59, %v1289_v46  ;;  %vm1296_vm1 = vweird.f32 %v1557_v59 }
0x12f9   :  { %vm1297_vm3 = vmor %vm1295_vm2, %vm1296_vm1 }
0x12fa   :  { %v1292_v61 = vsub.f32 1.0, %v1291_v60 }
0x12fc   :  { %v1293_v62 = vmul.f32 %v1557_v59, %v1292_v61 }
0x12fe   :  { %v1294_v63 = vadd.f32 %v1557_v59, %v1293_v62 }
0x1300   :  { %v1298_v0 = vsel %vm1297_vm3, %v1557_v59, %v1294_v63 }
0x1301   :  { %v1303_v32 = vsel %vm1300_vm4, %v1302_v1, %v1298_v0 }
0x1302   :  { %v1306_v34 = vmul.f32 %v1303_v32, %v1190_v43 }
0x135f   :  { %v1309_v30 = vpop.permute.xlu0 %1308 }
0x1360   :  { %v1311_v38 = vmul.f32 %v1309_v30, %v1303_v32 }
0x1362   :  { %1313 = vrot.lane.b32.xlu1 %v1311_v38, %s1624_s1 }
0x13d4   :  { %v1314_v35 = vpop.permute.xlu1 %1313 }
0x13d5   :  { %v1316_v36 = vadd.f32 %v1314_v35, %v1306_v34 }
0x13d7   :  { %1558 = vtanh.f32 %v1316_v36 }
0x13dd   :  { %v1559_v39 = vpop.eup %1558 }
0x13de   :  { %1319 = vrot.lane.b32.xlu2 %v1559_v39, %s1624_s1 }
0x1438   :  { %v1320_v33 = vpop.permute.xlu2 %1319 }
0x1439   :  { %v1322_v37 = vmul.f32 %v1320_v33, %v1303_v32 }
0x143b   :  { %1332 = vrot.lane.b32.xlu0 %v1322_v37, %s1626_s2 }
0x14ad   :  { %v1333_v3 = vpop.permute.xlu0 %1332 }
0x14ae   :  { %1421 = vmatmul.msk.f32.vlgmr.msrb.gmra.mxu3 %vm65_vm0, %v1333_v3 }
0x1531   :  { %v1353_v4 = vpop.f32.mrf.mxu3 }
0x1532   :  { %v1354_v6 = vadd.f32 %v1431_v5, %v1353_v4 }
0x1534   :  { %1357 = vst.msk [vmem:[#allocation6] sm:$0xff] %vm1356_vm5, %v1354_v6 }
0x1535   :  { %1368 = dma.vmem_to_hbm [thread:$0]  %s1364_s10, 128, %s1366_s13, [#allocation5]  }
0x1536   :  { %1619 = dma.done.wait [#allocation5], 128  }
0x1537   :  { %1620 = vsyncadd [#allocation5], 4294967168 }
0x1538   :  { %1373 = vsyncpa [#allocation4], 1 }
0x1539   :  { %1374 = vsyncpa [#allocation5], 1 }

</bundles_post_ra>
